<compile_context>
chip_gen: v6e
topology: v6e:2x2x1
jax: 0.10.0
libtpu: 0.0.40
codegen_flags: <defaults>
</compile_context>

<pallas_src>
import functools
from typing import NamedTuple, Tuple

import jax
import jax.numpy as jnp
import numpy as np
from jax.experimental import pallas as pl
from jax.experimental.pallas import tpu as pltpu  # noqa: F401

FC1_OUT = 512
LANES = 128


def _round_up(x, m):
    return -(-x // m) * m


def _conv_out(n, k, s):
    return (n - k) // s + 1


# ----------------------------------------------------------------------------
# Static geometry (hashable -> usable as a jit static argument)
# ----------------------------------------------------------------------------
class ConvSpec(NamedTuple):
    taps: int        # kernel taps (kh*kw), conv1 after space-to-depth
    rows: int        # valid output spatial positions
    rows_pad: int    # per-tap padded rows (multiple of 8)
    in_rows: int     # (padded) spatial rows of the input activation
    kin: int         # input channels (effective for conv1)
    cout: int        # output channels
    sel_off: int     # slab row offsets
    w_off: int
    b_off: int


class DQNGeom(NamedTuple):
    cin: int
    s1: int
    h_use: int
    w_use: int
    convs: Tuple[ConvSpec, ConvSpec, ConvSpec]
    ohw3: int
    c3: int
    fc1_off: int
    fc1b_off: int
    fc2_off: int
    fc2b_off: int
    n_chunks: int
    n_actions: int
    npad: int
    flops: int
    bytes_accessed: int


def _selection_matrix(h_in, w_in, k, stride, rows_pad, in_cols):
    """0/1 gather matrix with per-tap row blocks padded to `rows_pad` rows and
    input columns padded to `in_cols`.  Row (j*rows_pad + oh*OW + ow) selects
    input position (stride*oh + kh, stride*ow + kw) for tap j = kh*k + kw."""
    oh, ow = _conv_out(h_in, k, stride), _conv_out(w_in, k, stride)
    assert oh * ow <= rows_pad and h_in * w_in <= in_cols
    s = np.zeros((k * k * rows_pad, in_cols), np.float32)
    for kh in range(k):
        for kw in range(k):
            base = (kh * k + kw) * rows_pad
            for i in range(oh):
                for j in range(ow):
                    s[base + i * ow + j,
                      (stride * i + kh) * w_in + (stride * j + kw)] = 1.0
    return s


# ----------------------------------------------------------------------------
# Parameter init (PyTorch layout) -- uniform(-1/sqrt(fan_in), 1/sqrt(fan_in))
# ----------------------------------------------------------------------------
def dqn_init_params(key, in_channels, n_actions, input_hw):
    h, w = input_hw

    def u(k, shape, fan_in):
        bound = 1.0 / np.sqrt(fan_in)
        return jax.random.uniform(k, shape, jnp.float32, -bound, bound)

    keys = jax.random.split(key, 10)
    p = {}
    p["conv1_w"] = u(keys[0], (32, in_channels, 8, 8), in_channels * 8 * 8)
    p["conv1_b"] = u(keys[1], (32,), in_channels * 8 * 8)
    p["conv2_w"] = u(keys[2], (64, 32, 4, 4), 32 * 4 * 4)
    p["conv2_b"] = u(keys[3], (64,), 32 * 4 * 4)
    p["conv3_w"] = u(keys[4], (64, 64, 3, 3), 64 * 3 * 3)
    p["conv3_b"] = u(keys[5], (64,), 64 * 3 * 3)

    # fc_input_dims exactly as calculate_conv_output_dims does (batch = 1)
    h1, w1 = (h - 8) // 4 + 1, (w - 8) // 4 + 1
    h2, w2 = (h1 - 4) // 2 + 1, (w1 - 4) // 2 + 1
    h3, w3 = h2 - 2, w2 - 2
    fc_in = 64 * h3 * w3
    p["fc1_w"] = u(keys[6], (fc_in, 512), fc_in)   # stored (in, out)
    p["fc1_b"] = u(keys[7], (512,), fc_in)
    p["fc2_w"] = u(keys[8], (512, n_actions), 512)
    p["fc2_b"] = u(keys[9], (n_actions,), 512)
    return p


# ----------------------------------------------------------------------------
# One-time preparation: pack every constant into ONE lane-dense bf16 slab
# ----------------------------------------------------------------------------
def dqn_prepare(params, in_channels, n_actions, input_hw):
    cin = in_channels
    h, w = input_hw
    k1, s1, c1 = 8, 4, 32
    k2, s2, c2 = 4, 2, 64
    k3, s3, c3 = 3, 1, 64
    assert k1 % s1 == 0, "space-to-depth reduction of conv1 needs k1 % s1 == 0"
    assert n_actions <= LANES

    oh1, ow1 = _conv_out(h, k1, s1), _conv_out(w, k1, s1)
    h_use, w_use = (oh1 - 1) * s1 + k1, (ow1 - 1) * s1 + k1   # crop unused border
    gh, gw = h_use // s1, w_use // s1
    ke1 = k1 // s1                                            # effective 2x2 kernel
    ceff = s1 * s1 * cin                                      # effective input chans
    oh2, ow2 = _conv_out(oh1, k2, s2), _conv_out(ow1, k2, s2)
    oh3, ow3 = _conv_out(oh2, k3, s3), _conv_out(ow2, k3, s3)
    ohw3 = oh3 * ow3
    npad = _round_up(n_actions, LANES)
    n_chunks = FC1_OUT // LANES

    rows1, rows2, rows3 = oh1 * ow1, oh2 * ow2, ohw3
    rp1, rp2, rp3 = _round_up(rows1, 8), _round_up(rows2, 8), _round_up(rows3, 8)

    # conv weights as per-tap (kin, cout) stacks, matching the sel tap ordering
    w1 = np.asarray(params["conv1_w"], np.float32).reshape(c1, cin, ke1, s1, ke1, s1)
    w1m = w1.transpose(2, 4, 3, 5, 1, 0).reshape(ke1 * ke1 * ceff, c1)
    w2m = np.asarray(params["conv2_w"], np.float32).transpose(2, 3, 1, 0).reshape(k2 * k2 * c1, c2)
    w3m = np.asarray(params["conv3_w"], np.float32).transpose(2, 3, 1, 0).reshape(k3 * k3 * c2, c3)

    # selection matrices: per-tap rows padded to 8, input columns padded to the
    # (padded) row count of the producing layer -> pad rows never contribute.
    sel1 = _selection_matrix(gh, gw, ke1, 1, rp1, gh * gw)
    sel2 = _selection_matrix(oh1, ow1, k2, s2, rp2, rp1)
    sel3 = _selection_matrix(oh2, ow2, k3, s3, rp3, rp2)

    # fc1: reorder rows from torch-flatten (channel, spatial) order to
    # (spatial, channel) order and split the 512 hidden lanes into 128-chunks.
    fc1 = np.asarray(params["fc1_w"], np.float32).reshape(c3, ohw3, FC1_OUT)
    fc1 = fc1.transpose(1, 0, 2).reshape(ohw3 * c3, FC1_OUT)
    fc1m = np.concatenate([fc1[:, c * LANES:(c + 1) * LANES] for c in range(n_chunks)], axis=0)
    fc1b = np.zeros((n_chunks * 8, LANES), np.float32)
    fc1b_np = np.asarray(params["fc1_b"], np.float32)
    for c in range(n_chunks):
        fc1b[c * 8, :] = fc1b_np[c * LANES:(c + 1) * LANES]
    fc2m = np.zeros((FC1_OUT, npad), np.float32)
    fc2m[:, :n_actions] = np.asarray(params["fc2_w"], np.float32)
    fc2b = np.zeros((1, npad), np.float32)
    fc2b[0, :n_actions] = np.asarray(params["fc2_b"], np.float32)

    b1 = np.asarray(params["conv1_b"], np.float32).reshape(1, c1)
    b2 = np.asarray(params["conv2_b"], np.float32).reshape(1, c2)
    b3 = np.asarray(params["conv3_b"], np.float32).reshape(1, c3)

    # ---- pack everything into one (rows, 128) bf16 slab (one input DMA) ----
    pieces = []
    cursor = 0

    def add(arr):
        nonlocal cursor
        # TODO(synk): for larger frames (e.g. 84x84 Atari, gh*gw=441) split
        # wide sel matrices into 128-column chunks; 36x36 fits directly.
        assert arr.shape[1] <= LANES, "slab pieces must be <= 128 lanes wide"
        off = cursor
        pieces.append((off, arr))
        cursor += _round_up(arr.shape[0], 8)
        return off

    sel1_off, w1_off, b1_off = add(sel1), add(w1m), add(b1)
    sel2_off, w2_off, b2_off = add(sel2), add(w2m), add(b2)
    sel3_off, w3_off, b3_off = add(sel3), add(w3m), add(b3)
    fc1_off, fc1b_off = add(fc1m), add(fc1b)
    fc2_off, fc2b_off = add(fc2m), add(fc2b)

    slab_np = np.zeros((_round_up(cursor, 16), LANES), np.float32)
    for off, arr in pieces:
        slab_np[off:off + arr.shape[0], :arr.shape[1]] = arr
    slab = jnp.asarray(slab_np, jnp.bfloat16)     # 0/1 sel entries are exact in bf16

    convs = (
        ConvSpec(ke1 * ke1, rows1, rp1, gh * gw, ceff, c1, sel1_off, w1_off, b1_off),
        ConvSpec(k2 * k2, rows2, rp2, rp1, c1, c2, sel2_off, w2_off, b2_off),
        ConvSpec(k3 * k3, rows3, rp3, rp2, c2, c3, sel3_off, w3_off, b3_off),
    )

    flops = 0
    for cs in convs:
        flops += 2 * (cs.taps * cs.rows_pad) * cs.in_rows * cs.kin       # gather matmul
        flops += cs.taps * 2 * cs.rows_pad * cs.kin * cs.cout            # per-tap weight matmuls
    flops += n_chunks * (ohw3 * 2 * c3 * LANES + 2 * LANES * npad)       # fc1 + fc2
    bytes_accessed = int(slab.size) * 2 + gh * gw * ceff * 2 + npad * 4

    geom = DQNGeom(cin=cin, s1=s1, h_use=h_use, w_use=w_use, convs=convs,
                   ohw3=ohw3, c3=c3, fc1_off=fc1_off, fc1b_off=fc1b_off,
                   fc2_off=fc2_off, fc2b_off=fc2b_off, n_chunks=n_chunks,
                   n_actions=n_actions, npad=npad,
                   flops=int(flops), bytes_accessed=int(bytes_accessed))
    return slab, geom


# ----------------------------------------------------------------------------
# Fused Pallas kernel: conv1 -> conv2 -> conv3 -> fc1 -> fc2, all in VMEM
# ----------------------------------------------------------------------------
def _dqn_fused_kernel(z_ref, slab_ref, o_ref, *, geom: DQNGeom):
    f32, bf16 = jnp.float32, jnp.bfloat16

    def conv(act, cs: ConvSpec):
        # One full-Sel gather matmul (sel is 0/1 with <=1 one per row, so `pa`
        # entries are exact copies of `act` entries and the bf16 cast below is
        # lossless), followed by one small per-tap weight matmul each.
        sel = slab_ref[cs.sel_off:cs.sel_off + cs.taps * cs.rows_pad, :cs.in_rows]
        pa = jnp.dot(sel, act, preferred_element_type=f32)    # (taps*rows_pad, kin)
        acc = slab_ref[cs.b_off:cs.b_off + 1, :cs.cout].astype(f32)   # (1,cout) bcast
        for j in range(cs.taps):
            lhs = pa[j * cs.rows_pad:(j + 1) * cs.rows_pad, :].astype(bf16)
            rhs = slab_ref[cs.w_off + j * cs.kin:cs.w_off + (j + 1) * cs.kin, :cs.cout]
            acc = acc + jnp.dot(lhs, rhs, preferred_element_type=f32)
        # rows >= cs.rows are padding artifacts; the next layer's sel columns /
        # fc1 weight rows there are zero, so they never contribute.
        return jnp.maximum(acc, 0.0).astype(bf16)             # (rows_pad, cout)

    a = z_ref[...]                                            # (GH*GW, 16*Cin) bf16
    for cs in geom.convs:
        a = conv(a, cs)                                       # ends (rp3, 64) bf16

    # fc1 -> relu -> fc2 in 128-lane chunks of the 512 hidden units so every
    # matmul and the final store are lane-dense (fc2 pre-padded to 128 lanes).
    out = slab_ref[geom.fc2b_off:geom.fc2b_off + 1, :].astype(f32)     # (1, NPAD)
    for c in range(geom.n_chunks):
        f1 = slab_ref[geom.fc1b_off + c * 8:geom.fc1b_off + c * 8 + 1, :].astype(f32)
        # TODO(synk): for larger frames (ohw3 > 1) flatten `a` into lanes and do
        # one matmul per chunk instead of this per-spatial-row unroll.
        for r in range(geom.ohw3):                # ohw3 == 1 here -> single matmul
            w_off = geom.fc1_off + (c * geom.ohw3 + r) * geom.c3
            f1 = f1 + jnp.dot(a[r:r + 1, :], slab_ref[w_off:w_off + geom.c3, :],
                              preferred_element_type=f32)
        f1 = jnp.maximum(f1, 0.0).astype(bf16)                # (1, 128)
        out = out + jnp.dot(f1,
                            slab_ref[geom.fc2_off + c * LANES:
                                     geom.fc2_off + (c + 1) * LANES, :],
                            preferred_element_type=f32)
    o_ref[...] = out.astype(o_ref.dtype)                      # (1, 128) lane-dense


@functools.partial(jax.jit, static_argnums=2)
def dqn_forward_pallas(slab, state, geom: DQNGeom):
    """state: (1, C, H, W) f32 NCHW -> (n_actions,) f32 (batch-1 semantics)."""
    cin, s1 = geom.cin, geom.s1
    gh, gw = geom.h_use // s1, geom.w_use // s1

    # Space-to-depth (block s1) of the input: makes conv1 an effective 2x2
    # stride-1 conv so the in-kernel gather matrix stays tiny.  Three cheap XLA
    # ops on a ~20 KB tensor, fused with the bf16 cast.
    x = state[0, :, :geom.h_use, :geom.w_use]                 # (Cin, H_use, W_use)
    z = x.reshape(cin, gh, s1, gw, s1).transpose(1, 3, 2, 4, 0)
    z = z.reshape(gh * gw, s1 * s1 * cin).astype(jnp.bfloat16)

    out = pl.pallas_call(
        functools.partial(_dqn_fused_kernel, geom=geom),
        out_shape=jax.ShapeDtypeStruct((1, geom.npad), jnp.float32),
        # Single block, no grid, everything VMEM resident: 2 input DMAs total.
        in_specs=[pl.BlockSpec(z.shape, lambda: (0, 0)),
                  pl.BlockSpec(slab.shape, lambda: (0, 0))],
        out_specs=pl.BlockSpec((1, geom.npad), lambda: (0, 0)),
        cost_estimate=pl.CostEstimate(flops=geom.flops, transcendentals=0,
                                      bytes_accessed=geom.bytes_accessed),
    )(z, slab)
    # TODO(synk): if batched/vectorized-env inference is ever wanted, stack the
    # batch into the M (row) dimension of z and all downstream matmuls (the
    # torch module's flatten is batch-1 only as written).
    return out[0, :geom.n_actions]


# ----------------------------------------------------------------------------
# Pure-JAX reference (torch-equivalent, f32) for the correctness check
# ----------------------------------------------------------------------------
def dqn_forward_ref(params, state):
    def conv(x, w, b, s):
        y = jax.lax.conv_general_dilated(
            x, w, window_strides=(s, s), padding="VALID",
            dimension_numbers=("NCHW", "OIHW", "NCHW"))
        return jax.nn.relu(y + b[None, :, None, None])

    c1 = conv(state, params["conv1_w"], params["conv1_b"], 4)
    c2 = conv(c1, params["conv2_w"], params["conv2_b"], 2)
    c3 = conv(c2, params["conv3_w"], params["conv3_b"], 1)
    flat = c3.reshape(-1)                                     # torch.flatten(conv3)
    h = jax.nn.relu(flat @ params["fc1_w"] + params["fc1_b"])
    return h @ params["fc2_w"] + params["fc2_b"]


if __name__ == "__main__":
    # (4, 36, 36) is the smallest spatial size the conv stack admits
    # (conv3 output 64x1x1 -> fc_input_dims = 64).  Batch must be 1 because the
    # original forward flattens the batch dim before fc1.
    in_channels, H, W = 4, 36, 36
    n_actions = 6
    batch = 1

    key = jax.random.PRNGKey(0)
    pkey, xkey = jax.random.split(key)
    params = dqn_init_params(pkey, in_channels, n_actions, (H, W))
    x = jax.random.normal(xkey, (batch, in_channels, H, W), jnp.float32)

    slab, geom = dqn_prepare(params, in_channels, n_actions, (H, W))

    actions = dqn_forward_pallas(slab, x, geom)
    actions = jax.block_until_ready(actions)

    ref = dqn_forward_ref(params, x)
    # bf16 weights/activations with f32 accumulation vs an f32 reference.
    np.testing.assert_allclose(np.asarray(actions), np.asarray(ref),
                               rtol=2e-2, atol=2e-2)
    assert actions.shape == (n_actions,)
    print("KERNEL_OK")
</pallas_src>

<mosaic_0001>
module attributes {stable_mosaic.version = 11 : i64} {
  func.func @_dqn_fused_kernel(%arg0: memref<81x64xbf16, #tpu.memory_space<vmem>>, %arg1: memref<2768x128xbf16, #tpu.memory_space<vmem>>, %arg2: memref<1x128xf32, #tpu.memory_space<vmem>>) attributes {dimension_semantics = [], scalar_prefetch = 0 : i64, scratch_operands = 0 : i64, tpu.core_type = #tpu.core_type<tc>} {
    %c0 = arith.constant 0 : index
    %c0_0 = arith.constant 0 : index
    %0 = vector.load %arg0[%c0, %c0_0] : memref<81x64xbf16, #tpu.memory_space<vmem>>, vector<81x64xbf16>
    %c0_1 = arith.constant 0 : index
    %c0_2 = arith.constant 0 : index
    %1 = vector.load %arg1[%c0_1, %c0_2] : memref<2768x128xbf16, #tpu.memory_space<vmem>>, vector<256x81xbf16>
    %cst = arith.constant dense<0.000000e+00> : vector<256x64xf32>
    %2 = tpu.matmul %1, %0, %cst {dimension_numbers = #tpu.dot_dimension_numbers<[1], [0], [0], [1], [0, 0, 1, 1], [], []>} : vector<256x81xbf16>, vector<81x64xbf16>, vector<256x64xf32> -> vector<256x64xf32>
    %c512 = arith.constant 512 : index
    %c0_3 = arith.constant 0 : index
    %3 = vector.load %arg1[%c512, %c0_3] : memref<2768x128xbf16, #tpu.memory_space<vmem>>, vector<1x32xbf16>
    %4 = arith.extf %3 : vector<1x32xbf16> to vector<1x32xf32>
    %5 = vector.extract_strided_slice %2 {offsets = [0, 0], sizes = [64, 64], strides = [1, 1]} : vector<256x64xf32> to vector<64x64xf32>
    %6 = arith.truncf %5 : vector<64x64xf32> to vector<64x64xbf16>
    %c256 = arith.constant 256 : index
    %c0_4 = arith.constant 0 : index
    %7 = vector.load %arg1[%c256, %c0_4] : memref<2768x128xbf16, #tpu.memory_space<vmem>>, vector<64x32xbf16>
    %cst_5 = arith.constant dense<0.000000e+00> : vector<64x32xf32>
    %8 = tpu.matmul %6, %7, %cst_5 {dimension_numbers = #tpu.dot_dimension_numbers<[1], [0], [0], [1], [0, 0, 1, 1], [], []>} : vector<64x64xbf16>, vector<64x32xbf16>, vector<64x32xf32> -> vector<64x32xf32>
    %9 = vector.broadcast %4 : vector<1x32xf32> to vector<64x32xf32>
    %10 = arith.addf %9, %8 : vector<64x32xf32>
    %11 = vector.extract_strided_slice %2 {offsets = [64, 0], sizes = [64, 64], strides = [1, 1]} : vector<256x64xf32> to vector<64x64xf32>
    %12 = arith.truncf %11 : vector<64x64xf32> to vector<64x64xbf16>
    %c320 = arith.constant 320 : index
    %c0_6 = arith.constant 0 : index
    %13 = vector.load %arg1[%c320, %c0_6] : memref<2768x128xbf16, #tpu.memory_space<vmem>>, vector<64x32xbf16>
    %cst_7 = arith.constant dense<0.000000e+00> : vector<64x32xf32>
    %14 = tpu.matmul %12, %13, %cst_7 {dimension_numbers = #tpu.dot_dimension_numbers<[1], [0], [0], [1], [0, 0, 1, 1], [], []>} : vector<64x64xbf16>, vector<64x32xbf16>, vector<64x32xf32> -> vector<64x32xf32>
    %15 = arith.addf %10, %14 : vector<64x32xf32>
    %16 = vector.extract_strided_slice %2 {offsets = [128, 0], sizes = [64, 64], strides = [1, 1]} : vector<256x64xf32> to vector<64x64xf32>
    %17 = arith.truncf %16 : vector<64x64xf32> to vector<64x64xbf16>
    %c384 = arith.constant 384 : index
    %c0_8 = arith.constant 0 : index
    %18 = vector.load %arg1[%c384, %c0_8] : memref<2768x128xbf16, #tpu.memory_space<vmem>>, vector<64x32xbf16>
    %cst_9 = arith.constant dense<0.000000e+00> : vector<64x32xf32>
    %19 = tpu.matmul %17, %18, %cst_9 {dimension_numbers = #tpu.dot_dimension_numbers<[1], [0], [0], [1], [0, 0, 1, 1], [], []>} : vector<64x64xbf16>, vector<64x32xbf16>, vector<64x32xf32> -> vector<64x32xf32>
    %20 = arith.addf %15, %19 : vector<64x32xf32>
    %21 = vector.extract_strided_slice %2 {offsets = [192, 0], sizes = [64, 64], strides = [1, 1]} : vector<256x64xf32> to vector<64x64xf32>
    %22 = arith.truncf %21 : vector<64x64xf32> to vector<64x64xbf16>
    %c448 = arith.constant 448 : index
    %c0_10 = arith.constant 0 : index
    %23 = vector.load %arg1[%c448, %c0_10] : memref<2768x128xbf16, #tpu.memory_space<vmem>>, vector<64x32xbf16>
    %cst_11 = arith.constant dense<0.000000e+00> : vector<64x32xf32>
    %24 = tpu.matmul %22, %23, %cst_11 {dimension_numbers = #tpu.dot_dimension_numbers<[1], [0], [0], [1], [0, 0, 1, 1], [], []>} : vector<64x64xbf16>, vector<64x32xbf16>, vector<64x32xf32> -> vector<64x32xf32>
    %25 = arith.addf %20, %24 : vector<64x32xf32>
    %cst_12 = arith.constant 0.000000e+00 : f32
    %26 = vector.broadcast %cst_12 : f32 to vector<64x32xf32>
    %27 = arith.maximumf %25, %26 : vector<64x32xf32>
    %28 = arith.truncf %27 : vector<64x32xf32> to vector<64x32xbf16>
    %c520 = arith.constant 520 : index
    %c0_13 = arith.constant 0 : index
    %29 = vector.load %arg1[%c520, %c0_13] : memref<2768x128xbf16, #tpu.memory_space<vmem>>, vector<256x64xbf16>
    %cst_14 = arith.constant dense<0.000000e+00> : vector<256x32xf32>
    %30 = tpu.matmul %29, %28, %cst_14 {dimension_numbers = #tpu.dot_dimension_numbers<[1], [0], [0], [1], [0, 0, 1, 1], [], []>} : vector<256x64xbf16>, vector<64x32xbf16>, vector<256x32xf32> -> vector<256x32xf32>
    %c1288 = arith.constant 1288 : index
    %c0_15 = arith.constant 0 : index
    %31 = vector.load %arg1[%c1288, %c0_15] : memref<2768x128xbf16, #tpu.memory_space<vmem>>, vector<1x64xbf16>
    %32 = arith.extf %31 : vector<1x64xbf16> to vector<1x64xf32>
    %33 = vector.extract_strided_slice %30 {offsets = [0, 0], sizes = [16, 32], strides = [1, 1]} : vector<256x32xf32> to vector<16x32xf32>
    %34 = arith.truncf %33 : vector<16x32xf32> to vector<16x32xbf16>
    %c776 = arith.constant 776 : index
    %c0_16 = arith.constant 0 : index
    %35 = vector.load %arg1[%c776, %c0_16] : memref<2768x128xbf16, #tpu.memory_space<vmem>>, vector<32x64xbf16>
    %cst_17 = arith.constant dense<0.000000e+00> : vector<16x64xf32>
    %36 = tpu.matmul %34, %35, %cst_17 {dimension_numbers = #tpu.dot_dimension_numbers<[1], [0], [0], [1], [0, 0, 1, 1], [], []>} : vector<16x32xbf16>, vector<32x64xbf16>, vector<16x64xf32> -> vector<16x64xf32>
    %37 = vector.broadcast %32 : vector<1x64xf32> to vector<16x64xf32>
    %38 = arith.addf %37, %36 : vector<16x64xf32>
    %39 = vector.extract_strided_slice %30 {offsets = [16, 0], sizes = [16, 32], strides = [1, 1]} : vector<256x32xf32> to vector<16x32xf32>
    %40 = arith.truncf %39 : vector<16x32xf32> to vector<16x32xbf16>
    %c808 = arith.constant 808 : index
    %c0_18 = arith.constant 0 : index
    %41 = vector.load %arg1[%c808, %c0_18] : memref<2768x128xbf16, #tpu.memory_space<vmem>>, vector<32x64xbf16>
    %cst_19 = arith.constant dense<0.000000e+00> : vector<16x64xf32>
    %42 = tpu.matmul %40, %41, %cst_19 {dimension_numbers = #tpu.dot_dimension_numbers<[1], [0], [0], [1], [0, 0, 1, 1], [], []>} : vector<16x32xbf16>, vector<32x64xbf16>, vector<16x64xf32> -> vector<16x64xf32>
    %43 = arith.addf %38, %42 : vector<16x64xf32>
    %44 = vector.extract_strided_slice %30 {offsets = [32, 0], sizes = [16, 32], strides = [1, 1]} : vector<256x32xf32> to vector<16x32xf32>
    %45 = arith.truncf %44 : vector<16x32xf32> to vector<16x32xbf16>
    %c840 = arith.constant 840 : index
    %c0_20 = arith.constant 0 : index
    %46 = vector.load %arg1[%c840, %c0_20] : memref<2768x128xbf16, #tpu.memory_space<vmem>>, vector<32x64xbf16>
    %cst_21 = arith.constant dense<0.000000e+00> : vector<16x64xf32>
    %47 = tpu.matmul %45, %46, %cst_21 {dimension_numbers = #tpu.dot_dimension_numbers<[1], [0], [0], [1], [0, 0, 1, 1], [], []>} : vector<16x32xbf16>, vector<32x64xbf16>, vector<16x64xf32> -> vector<16x64xf32>
    %48 = arith.addf %43, %47 : vector<16x64xf32>
    %49 = vector.extract_strided_slice %30 {offsets = [48, 0], sizes = [16, 32], strides = [1, 1]} : vector<256x32xf32> to vector<16x32xf32>
    %50 = arith.truncf %49 : vector<16x32xf32> to vector<16x32xbf16>
    %c872 = arith.constant 872 : index
    %c0_22 = arith.constant 0 : index
    %51 = vector.load %arg1[%c872, %c0_22] : memref<2768x128xbf16, #tpu.memory_space<vmem>>, vector<32x64xbf16>
    %cst_23 = arith.constant dense<0.000000e+00> : vector<16x64xf32>
    %52 = tpu.matmul %50, %51, %cst_23 {dimension_numbers = #tpu.dot_dimension_numbers<[1], [0], [0], [1], [0, 0, 1, 1], [], []>} : vector<16x32xbf16>, vector<32x64xbf16>, vector<16x64xf32> -> vector<16x64xf32>
    %53 = arith.addf %48, %52 : vector<16x64xf32>
    %54 = vector.extract_strided_slice %30 {offsets = [64, 0], sizes = [16, 32], strides = [1, 1]} : vector<256x32xf32> to vector<16x32xf32>
    %55 = arith.truncf %54 : vector<16x32xf32> to vector<16x32xbf16>
    %c904 = arith.constant 904 : index
    %c0_24 = arith.constant 0 : index
    %56 = vector.load %arg1[%c904, %c0_24] : memref<2768x128xbf16, #tpu.memory_space<vmem>>, vector<32x64xbf16>
    %cst_25 = arith.constant dense<0.000000e+00> : vector<16x64xf32>
    %57 = tpu.matmul %55, %56, %cst_25 {dimension_numbers = #tpu.dot_dimension_numbers<[1], [0], [0], [1], [0, 0, 1, 1], [], []>} : vector<16x32xbf16>, vector<32x64xbf16>, vector<16x64xf32> -> vector<16x64xf32>
    %58 = arith.addf %53, %57 : vector<16x64xf32>
    %59 = vector.extract_strided_slice %30 {offsets = [80, 0], sizes = [16, 32], strides = [1, 1]} : vector<256x32xf32> to vector<16x32xf32>
    %60 = arith.truncf %59 : vector<16x32xf32> to vector<16x32xbf16>
    %c936 = arith.constant 936 : index
    %c0_26 = arith.constant 0 : index
    %61 = vector.load %arg1[%c936, %c0_26] : memref<2768x128xbf16, #tpu.memory_space<vmem>>, vector<32x64xbf16>
    %cst_27 = arith.constant dense<0.000000e+00> : vector<16x64xf32>
    %62 = tpu.matmul %60, %61, %cst_27 {dimension_numbers = #tpu.dot_dimension_numbers<[1], [0], [0], [1], [0, 0, 1, 1], [], []>} : vector<16x32xbf16>, vector<32x64xbf16>, vector<16x64xf32> -> vector<16x64xf32>
    %63 = arith.addf %58, %62 : vector<16x64xf32>
    %64 = vector.extract_strided_slice %30 {offsets = [96, 0], sizes = [16, 32], strides = [1, 1]} : vector<256x32xf32> to vector<16x32xf32>
    %65 = arith.truncf %64 : vector<16x32xf32> to vector<16x32xbf16>
    %c968 = arith.constant 968 : index
    %c0_28 = arith.constant 0 : index
    %66 = vector.load %arg1[%c968, %c0_28] : memref<2768x128xbf16, #tpu.memory_space<vmem>>, vector<32x64xbf16>
    %cst_29 = arith.constant dense<0.000000e+00> : vector<16x64xf32>
    %67 = tpu.matmul %65, %66, %cst_29 {dimension_numbers = #tpu.dot_dimension_numbers<[1], [0], [0], [1], [0, 0, 1, 1], [], []>} : vector<16x32xbf16>, vector<32x64xbf16>, vector<16x64xf32> -> vector<16x64xf32>
    %68 = arith.addf %63, %67 : vector<16x64xf32>
    %69 = vector.extract_strided_slice %30 {offsets = [112, 0], sizes = [16, 32], strides = [1, 1]} : vector<256x32xf32> to vector<16x32xf32>
    %70 = arith.truncf %69 : vector<16x32xf32> to vector<16x32xbf16>
    %c1000 = arith.constant 1000 : index
    %c0_30 = arith.constant 0 : index
    %71 = vector.load %arg1[%c1000, %c0_30] : memref<2768x128xbf16, #tpu.memory_space<vmem>>, vector<32x64xbf16>
    %cst_31 = arith.constant dense<0.000000e+00> : vector<16x64xf32>
    %72 = tpu.matmul %70, %71, %cst_31 {dimension_numbers = #tpu.dot_dimension_numbers<[1], [0], [0], [1], [0, 0, 1, 1], [], []>} : vector<16x32xbf16>, vector<32x64xbf16>, vector<16x64xf32> -> vector<16x64xf32>
    %73 = arith.addf %68, %72 : vector<16x64xf32>
    %74 = vector.extract_strided_slice %30 {offsets = [128, 0], sizes = [16, 32], strides = [1, 1]} : vector<256x32xf32> to vector<16x32xf32>
    %75 = arith.truncf %74 : vector<16x32xf32> to vector<16x32xbf16>
    %c1032 = arith.constant 1032 : index
    %c0_32 = arith.constant 0 : index
    %76 = vector.load %arg1[%c1032, %c0_32] : memref<2768x128xbf16, #tpu.memory_space<vmem>>, vector<32x64xbf16>
    %cst_33 = arith.constant dense<0.000000e+00> : vector<16x64xf32>
    %77 = tpu.matmul %75, %76, %cst_33 {dimension_numbers = #tpu.dot_dimension_numbers<[1], [0], [0], [1], [0, 0, 1, 1], [], []>} : vector<16x32xbf16>, vector<32x64xbf16>, vector<16x64xf32> -> vector<16x64xf32>
    %78 = arith.addf %73, %77 : vector<16x64xf32>
    %79 = vector.extract_strided_slice %30 {offsets = [144, 0], sizes = [16, 32], strides = [1, 1]} : vector<256x32xf32> to vector<16x32xf32>
    %80 = arith.truncf %79 : vector<16x32xf32> to vector<16x32xbf16>
    %c1064 = arith.constant 1064 : index
    %c0_34 = arith.constant 0 : index
    %81 = vector.load %arg1[%c1064, %c0_34] : memref<2768x128xbf16, #tpu.memory_space<vmem>>, vector<32x64xbf16>
    %cst_35 = arith.constant dense<0.000000e+00> : vector<16x64xf32>
    %82 = tpu.matmul %80, %81, %cst_35 {dimension_numbers = #tpu.dot_dimension_numbers<[1], [0], [0], [1], [0, 0, 1, 1], [], []>} : vector<16x32xbf16>, vector<32x64xbf16>, vector<16x64xf32> -> vector<16x64xf32>
    %83 = arith.addf %78, %82 : vector<16x64xf32>
    %84 = vector.extract_strided_slice %30 {offsets = [160, 0], sizes = [16, 32], strides = [1, 1]} : vector<256x32xf32> to vector<16x32xf32>
    %85 = arith.truncf %84 : vector<16x32xf32> to vector<16x32xbf16>
    %c1096 = arith.constant 1096 : index
    %c0_36 = arith.constant 0 : index
    %86 = vector.load %arg1[%c1096, %c0_36] : memref<2768x128xbf16, #tpu.memory_space<vmem>>, vector<32x64xbf16>
    %cst_37 = arith.constant dense<0.000000e+00> : vector<16x64xf32>
    %87 = tpu.matmul %85, %86, %cst_37 {dimension_numbers = #tpu.dot_dimension_numbers<[1], [0], [0], [1], [0, 0, 1, 1], [], []>} : vector<16x32xbf16>, vector<32x64xbf16>, vector<16x64xf32> -> vector<16x64xf32>
    %88 = arith.addf %83, %87 : vector<16x64xf32>
    %89 = vector.extract_strided_slice %30 {offsets = [176, 0], sizes = [16, 32], strides = [1, 1]} : vector<256x32xf32> to vector<16x32xf32>
    %90 = arith.truncf %89 : vector<16x32xf32> to vector<16x32xbf16>
    %c1128 = arith.constant 1128 : index
    %c0_38 = arith.constant 0 : index
    %91 = vector.load %arg1[%c1128, %c0_38] : memref<2768x128xbf16, #tpu.memory_space<vmem>>, vector<32x64xbf16>
    %cst_39 = arith.constant dense<0.000000e+00> : vector<16x64xf32>
    %92 = tpu.matmul %90, %91, %cst_39 {dimension_numbers = #tpu.dot_dimension_numbers<[1], [0], [0], [1], [0, 0, 1, 1], [], []>} : vector<16x32xbf16>, vector<32x64xbf16>, vector<16x64xf32> -> vector<16x64xf32>
    %93 = arith.addf %88, %92 : vector<16x64xf32>
    %94 = vector.extract_strided_slice %30 {offsets = [192, 0], sizes = [16, 32], strides = [1, 1]} : vector<256x32xf32> to vector<16x32xf32>
    %95 = arith.truncf %94 : vector<16x32xf32> to vector<16x32xbf16>
    %c1160 = arith.constant 1160 : index
    %c0_40 = arith.constant 0 : index
    %96 = vector.load %arg1[%c1160, %c0_40] : memref<2768x128xbf16, #tpu.memory_space<vmem>>, vector<32x64xbf16>
    %cst_41 = arith.constant dense<0.000000e+00> : vector<16x64xf32>
    %97 = tpu.matmul %95, %96, %cst_41 {dimension_numbers = #tpu.dot_dimension_numbers<[1], [0], [0], [1], [0, 0, 1, 1], [], []>} : vector<16x32xbf16>, vector<32x64xbf16>, vector<16x64xf32> -> vector<16x64xf32>
    %98 = arith.addf %93, %97 : vector<16x64xf32>
    %99 = vector.extract_strided_slice %30 {offsets = [208, 0], sizes = [16, 32], strides = [1, 1]} : vector<256x32xf32> to vector<16x32xf32>
    %100 = arith.truncf %99 : vector<16x32xf32> to vector<16x32xbf16>
    %c1192 = arith.constant 1192 : index
    %c0_42 = arith.constant 0 : index
    %101 = vector.load %arg1[%c1192, %c0_42] : memref<2768x128xbf16, #tpu.memory_space<vmem>>, vector<32x64xbf16>
    %cst_43 = arith.constant dense<0.000000e+00> : vector<16x64xf32>
    %102 = tpu.matmul %100, %101, %cst_43 {dimension_numbers = #tpu.dot_dimension_numbers<[1], [0], [0], [1], [0, 0, 1, 1], [], []>} : vector<16x32xbf16>, vector<32x64xbf16>, vector<16x64xf32> -> vector<16x64xf32>
    %103 = arith.addf %98, %102 : vector<16x64xf32>
    %104 = vector.extract_strided_slice %30 {offsets = [224, 0], sizes = [16, 32], strides = [1, 1]} : vector<256x32xf32> to vector<16x32xf32>
    %105 = arith.truncf %104 : vector<16x32xf32> to vector<16x32xbf16>
    %c1224 = arith.constant 1224 : index
    %c0_44 = arith.constant 0 : index
    %106 = vector.load %arg1[%c1224, %c0_44] : memref<2768x128xbf16, #tpu.memory_space<vmem>>, vector<32x64xbf16>
    %cst_45 = arith.constant dense<0.000000e+00> : vector<16x64xf32>
    %107 = tpu.matmul %105, %106, %cst_45 {dimension_numbers = #tpu.dot_dimension_numbers<[1], [0], [0], [1], [0, 0, 1, 1], [], []>} : vector<16x32xbf16>, vector<32x64xbf16>, vector<16x64xf32> -> vector<16x64xf32>
    %108 = arith.addf %103, %107 : vector<16x64xf32>
    %109 = vector.extract_strided_slice %30 {offsets = [240, 0], sizes = [16, 32], strides = [1, 1]} : vector<256x32xf32> to vector<16x32xf32>
    %110 = arith.truncf %109 : vector<16x32xf32> to vector<16x32xbf16>
    %c1256 = arith.constant 1256 : index
    %c0_46 = arith.constant 0 : index
    %111 = vector.load %arg1[%c1256, %c0_46] : memref<2768x128xbf16, #tpu.memory_space<vmem>>, vector<32x64xbf16>
    %cst_47 = arith.constant dense<0.000000e+00> : vector<16x64xf32>
    %112 = tpu.matmul %110, %111, %cst_47 {dimension_numbers = #tpu.dot_dimension_numbers<[1], [0], [0], [1], [0, 0, 1, 1], [], []>} : vector<16x32xbf16>, vector<32x64xbf16>, vector<16x64xf32> -> vector<16x64xf32>
    %113 = arith.addf %108, %112 : vector<16x64xf32>
    %cst_48 = arith.constant 0.000000e+00 : f32
    %114 = vector.broadcast %cst_48 : f32 to vector<16x64xf32>
    %115 = arith.maximumf %113, %114 : vector<16x64xf32>
    %116 = arith.truncf %115 : vector<16x64xf32> to vector<16x64xbf16>
    %c1296 = arith.constant 1296 : index
    %c0_49 = arith.constant 0 : index
    %117 = vector.load %arg1[%c1296, %c0_49] : memref<2768x128xbf16, #tpu.memory_space<vmem>>, vector<72x16xbf16>
    %cst_50 = arith.constant dense<0.000000e+00> : vector<72x64xf32>
    %118 = tpu.matmul %117, %116, %cst_50 {dimension_numbers = #tpu.dot_dimension_numbers<[1], [0], [0], [1], [0, 0, 1, 1], [], []>} : vector<72x16xbf16>, vector<16x64xbf16>, vector<72x64xf32> -> vector<72x64xf32>
    %c1944 = arith.constant 1944 : index
    %c0_51 = arith.constant 0 : index
    %119 = vector.load %arg1[%c1944, %c0_51] : memref<2768x128xbf16, #tpu.memory_space<vmem>>, vector<1x64xbf16>
    %120 = arith.extf %119 : vector<1x64xbf16> to vector<1x64xf32>
    %121 = vector.extract_strided_slice %118 {offsets = [0, 0], sizes = [8, 64], strides = [1, 1]} : vector<72x64xf32> to vector<8x64xf32>
    %122 = arith.truncf %121 : vector<8x64xf32> to vector<8x64xbf16>
    %c1368 = arith.constant 1368 : index
    %c0_52 = arith.constant 0 : index
    %123 = vector.load %arg1[%c1368, %c0_52] : memref<2768x128xbf16, #tpu.memory_space<vmem>>, vector<64x64xbf16>
    %cst_53 = arith.constant dense<0.000000e+00> : vector<8x64xf32>
    %124 = tpu.matmul %122, %123, %cst_53 {dimension_numbers = #tpu.dot_dimension_numbers<[1], [0], [0], [1], [0, 0, 1, 1], [], []>} : vector<8x64xbf16>, vector<64x64xbf16>, vector<8x64xf32> -> vector<8x64xf32>
    %125 = vector.broadcast %120 : vector<1x64xf32> to vector<8x64xf32>
    %126 = arith.addf %125, %124 : vector<8x64xf32>
    %127 = vector.extract_strided_slice %118 {offsets = [8, 0], sizes = [8, 64], strides = [1, 1]} : vector<72x64xf32> to vector<8x64xf32>
    %128 = arith.truncf %127 : vector<8x64xf32> to vector<8x64xbf16>
    %c1432 = arith.constant 1432 : index
    %c0_54 = arith.constant 0 : index
    %129 = vector.load %arg1[%c1432, %c0_54] : memref<2768x128xbf16, #tpu.memory_space<vmem>>, vector<64x64xbf16>
    %cst_55 = arith.constant dense<0.000000e+00> : vector<8x64xf32>
    %130 = tpu.matmul %128, %129, %cst_55 {dimension_numbers = #tpu.dot_dimension_numbers<[1], [0], [0], [1], [0, 0, 1, 1], [], []>} : vector<8x64xbf16>, vector<64x64xbf16>, vector<8x64xf32> -> vector<8x64xf32>
    %131 = arith.addf %126, %130 : vector<8x64xf32>
    %132 = vector.extract_strided_slice %118 {offsets = [16, 0], sizes = [8, 64], strides = [1, 1]} : vector<72x64xf32> to vector<8x64xf32>
    %133 = arith.truncf %132 : vector<8x64xf32> to vector<8x64xbf16>
    %c1496 = arith.constant 1496 : index
    %c0_56 = arith.constant 0 : index
    %134 = vector.load %arg1[%c1496, %c0_56] : memref<2768x128xbf16, #tpu.memory_space<vmem>>, vector<64x64xbf16>
    %cst_57 = arith.constant dense<0.000000e+00> : vector<8x64xf32>
    %135 = tpu.matmul %133, %134, %cst_57 {dimension_numbers = #tpu.dot_dimension_numbers<[1], [0], [0], [1], [0, 0, 1, 1], [], []>} : vector<8x64xbf16>, vector<64x64xbf16>, vector<8x64xf32> -> vector<8x64xf32>
    %136 = arith.addf %131, %135 : vector<8x64xf32>
    %137 = vector.extract_strided_slice %118 {offsets = [24, 0], sizes = [8, 64], strides = [1, 1]} : vector<72x64xf32> to vector<8x64xf32>
    %138 = arith.truncf %137 : vector<8x64xf32> to vector<8x64xbf16>
    %c1560 = arith.constant 1560 : index
    %c0_58 = arith.constant 0 : index
    %139 = vector.load %arg1[%c1560, %c0_58] : memref<2768x128xbf16, #tpu.memory_space<vmem>>, vector<64x64xbf16>
    %cst_59 = arith.constant dense<0.000000e+00> : vector<8x64xf32>
    %140 = tpu.matmul %138, %139, %cst_59 {dimension_numbers = #tpu.dot_dimension_numbers<[1], [0], [0], [1], [0, 0, 1, 1], [], []>} : vector<8x64xbf16>, vector<64x64xbf16>, vector<8x64xf32> -> vector<8x64xf32>
    %141 = arith.addf %136, %140 : vector<8x64xf32>
    %142 = vector.extract_strided_slice %118 {offsets = [32, 0], sizes = [8, 64], strides = [1, 1]} : vector<72x64xf32> to vector<8x64xf32>
    %143 = arith.truncf %142 : vector<8x64xf32> to vector<8x64xbf16>
    %c1624 = arith.constant 1624 : index
    %c0_60 = arith.constant 0 : index
    %144 = vector.load %arg1[%c1624, %c0_60] : memref<2768x128xbf16, #tpu.memory_space<vmem>>, vector<64x64xbf16>
    %cst_61 = arith.constant dense<0.000000e+00> : vector<8x64xf32>
    %145 = tpu.matmul %143, %144, %cst_61 {dimension_numbers = #tpu.dot_dimension_numbers<[1], [0], [0], [1], [0, 0, 1, 1], [], []>} : vector<8x64xbf16>, vector<64x64xbf16>, vector<8x64xf32> -> vector<8x64xf32>
    %146 = arith.addf %141, %145 : vector<8x64xf32>
    %147 = vector.extract_strided_slice %118 {offsets = [40, 0], sizes = [8, 64], strides = [1, 1]} : vector<72x64xf32> to vector<8x64xf32>
    %148 = arith.truncf %147 : vector<8x64xf32> to vector<8x64xbf16>
    %c1688 = arith.constant 1688 : index
    %c0_62 = arith.constant 0 : index
    %149 = vector.load %arg1[%c1688, %c0_62] : memref<2768x128xbf16, #tpu.memory_space<vmem>>, vector<64x64xbf16>
    %cst_63 = arith.constant dense<0.000000e+00> : vector<8x64xf32>
    %150 = tpu.matmul %148, %149, %cst_63 {dimension_numbers = #tpu.dot_dimension_numbers<[1], [0], [0], [1], [0, 0, 1, 1], [], []>} : vector<8x64xbf16>, vector<64x64xbf16>, vector<8x64xf32> -> vector<8x64xf32>
    %151 = arith.addf %146, %150 : vector<8x64xf32>
    %152 = vector.extract_strided_slice %118 {offsets = [48, 0], sizes = [8, 64], strides = [1, 1]} : vector<72x64xf32> to vector<8x64xf32>
    %153 = arith.truncf %152 : vector<8x64xf32> to vector<8x64xbf16>
    %c1752 = arith.constant 1752 : index
    %c0_64 = arith.constant 0 : index
    %154 = vector.load %arg1[%c1752, %c0_64] : memref<2768x128xbf16, #tpu.memory_space<vmem>>, vector<64x64xbf16>
    %cst_65 = arith.constant dense<0.000000e+00> : vector<8x64xf32>
    %155 = tpu.matmul %153, %154, %cst_65 {dimension_numbers = #tpu.dot_dimension_numbers<[1], [0], [0], [1], [0, 0, 1, 1], [], []>} : vector<8x64xbf16>, vector<64x64xbf16>, vector<8x64xf32> -> vector<8x64xf32>
    %156 = arith.addf %151, %155 : vector<8x64xf32>
    %157 = vector.extract_strided_slice %118 {offsets = [56, 0], sizes = [8, 64], strides = [1, 1]} : vector<72x64xf32> to vector<8x64xf32>
    %158 = arith.truncf %157 : vector<8x64xf32> to vector<8x64xbf16>
    %c1816 = arith.constant 1816 : index
    %c0_66 = arith.constant 0 : index
    %159 = vector.load %arg1[%c1816, %c0_66] : memref<2768x128xbf16, #tpu.memory_space<vmem>>, vector<64x64xbf16>
    %cst_67 = arith.constant dense<0.000000e+00> : vector<8x64xf32>
    %160 = tpu.matmul %158, %159, %cst_67 {dimension_numbers = #tpu.dot_dimension_numbers<[1], [0], [0], [1], [0, 0, 1, 1], [], []>} : vector<8x64xbf16>, vector<64x64xbf16>, vector<8x64xf32> -> vector<8x64xf32>
    %161 = arith.addf %156, %160 : vector<8x64xf32>
    %162 = vector.extract_strided_slice %118 {offsets = [64, 0], sizes = [8, 64], strides = [1, 1]} : vector<72x64xf32> to vector<8x64xf32>
    %163 = arith.truncf %162 : vector<8x64xf32> to vector<8x64xbf16>
    %c1880 = arith.constant 1880 : index
    %c0_68 = arith.constant 0 : index
    %164 = vector.load %arg1[%c1880, %c0_68] : memref<2768x128xbf16, #tpu.memory_space<vmem>>, vector<64x64xbf16>
    %cst_69 = arith.constant dense<0.000000e+00> : vector<8x64xf32>
    %165 = tpu.matmul %163, %164, %cst_69 {dimension_numbers = #tpu.dot_dimension_numbers<[1], [0], [0], [1], [0, 0, 1, 1], [], []>} : vector<8x64xbf16>, vector<64x64xbf16>, vector<8x64xf32> -> vector<8x64xf32>
    %166 = arith.addf %161, %165 : vector<8x64xf32>
    %cst_70 = arith.constant 0.000000e+00 : f32
    %167 = vector.broadcast %cst_70 : f32 to vector<8x64xf32>
    %168 = arith.maximumf %166, %167 : vector<8x64xf32>
    %169 = arith.truncf %168 : vector<8x64xf32> to vector<8x64xbf16>
    %c2752 = arith.constant 2752 : index
    %c0_71 = arith.constant 0 : index
    %170 = vector.load %arg1[%c2752, %c0_71] : memref<2768x128xbf16, #tpu.memory_space<vmem>>, vector<1x128xbf16>
    %171 = arith.extf %170 : vector<1x128xbf16> to vector<1x128xf32>
    %c2208 = arith.constant 2208 : index
    %c0_72 = arith.constant 0 : index
    %172 = vector.load %arg1[%c2208, %c0_72] : memref<2768x128xbf16, #tpu.memory_space<vmem>>, vector<1x128xbf16>
    %173 = arith.extf %172 : vector<1x128xbf16> to vector<1x128xf32>
    %174 = vector.extract_strided_slice %169 {offsets = [0, 0], sizes = [1, 64], strides = [1, 1]} : vector<8x64xbf16> to vector<1x64xbf16>
    %c1952 = arith.constant 1952 : index
    %c0_73 = arith.constant 0 : index
    %175 = vector.load %arg1[%c1952, %c0_73] : memref<2768x128xbf16, #tpu.memory_space<vmem>>, vector<64x128xbf16>
    %cst_74 = arith.constant dense<0.000000e+00> : vector<1x128xf32>
    %176 = tpu.matmul %174, %175, %cst_74 {dimension_numbers = #tpu.dot_dimension_numbers<[1], [0], [0], [1], [0, 0, 1, 1], [], []>} : vector<1x64xbf16>, vector<64x128xbf16>, vector<1x128xf32> -> vector<1x128xf32>
    %177 = arith.addf %173, %176 : vector<1x128xf32>
    %cst_75 = arith.constant 0.000000e+00 : f32
    %178 = vector.broadcast %cst_75 : f32 to vector<1x128xf32>
    %179 = arith.maximumf %177, %178 : vector<1x128xf32>
    %180 = arith.truncf %179 : vector<1x128xf32> to vector<1x128xbf16>
    %c2240 = arith.constant 2240 : index
    %c0_76 = arith.constant 0 : index
    %181 = vector.load %arg1[%c2240, %c0_76] : memref<2768x128xbf16, #tpu.memory_space<vmem>>, vector<128x128xbf16>
    %cst_77 = arith.constant dense<0.000000e+00> : vector<1x128xf32>
    %182 = tpu.matmul %180, %181, %cst_77 {dimension_numbers = #tpu.dot_dimension_numbers<[1], [0], [0], [1], [0, 0, 1, 1], [], []>} : vector<1x128xbf16>, vector<128x128xbf16>, vector<1x128xf32> -> vector<1x128xf32>
    %183 = arith.addf %171, %182 : vector<1x128xf32>
    %c2216 = arith.constant 2216 : index
    %c0_78 = arith.constant 0 : index
    %184 = vector.load %arg1[%c2216, %c0_78] : memref<2768x128xbf16, #tpu.memory_space<vmem>>, vector<1x128xbf16>
    %185 = arith.extf %184 : vector<1x128xbf16> to vector<1x128xf32>
    %186 = vector.extract_strided_slice %169 {offsets = [0, 0], sizes = [1, 64], strides = [1, 1]} : vector<8x64xbf16> to vector<1x64xbf16>
    %c2016 = arith.constant 2016 : index
    %c0_79 = arith.constant 0 : index
    %187 = vector.load %arg1[%c2016, %c0_79] : memref<2768x128xbf16, #tpu.memory_space<vmem>>, vector<64x128xbf16>
    %cst_80 = arith.constant dense<0.000000e+00> : vector<1x128xf32>
    %188 = tpu.matmul %186, %187, %cst_80 {dimension_numbers = #tpu.dot_dimension_numbers<[1], [0], [0], [1], [0, 0, 1, 1], [], []>} : vector<1x64xbf16>, vector<64x128xbf16>, vector<1x128xf32> -> vector<1x128xf32>
    %189 = arith.addf %185, %188 : vector<1x128xf32>
    %cst_81 = arith.constant 0.000000e+00 : f32
    %190 = vector.broadcast %cst_81 : f32 to vector<1x128xf32>
    %191 = arith.maximumf %189, %190 : vector<1x128xf32>
    %192 = arith.truncf %191 : vector<1x128xf32> to vector<1x128xbf16>
    %c2368 = arith.constant 2368 : index
    %c0_82 = arith.constant 0 : index
    %193 = vector.load %arg1[%c2368, %c0_82] : memref<2768x128xbf16, #tpu.memory_space<vmem>>, vector<128x128xbf16>
    %cst_83 = arith.constant dense<0.000000e+00> : vector<1x128xf32>
    %194 = tpu.matmul %192, %193, %cst_83 {dimension_numbers = #tpu.dot_dimension_numbers<[1], [0], [0], [1], [0, 0, 1, 1], [], []>} : vector<1x128xbf16>, vector<128x128xbf16>, vector<1x128xf32> -> vector<1x128xf32>
    %195 = arith.addf %183, %194 : vector<1x128xf32>
    %c2224 = arith.constant 2224 : index
    %c0_84 = arith.constant 0 : index
    %196 = vector.load %arg1[%c2224, %c0_84] : memref<2768x128xbf16, #tpu.memory_space<vmem>>, vector<1x128xbf16>
    %197 = arith.extf %196 : vector<1x128xbf16> to vector<1x128xf32>
    %198 = vector.extract_strided_slice %169 {offsets = [0, 0], sizes = [1, 64], strides = [1, 1]} : vector<8x64xbf16> to vector<1x64xbf16>
    %c2080 = arith.constant 2080 : index
    %c0_85 = arith.constant 0 : index
    %199 = vector.load %arg1[%c2080, %c0_85] : memref<2768x128xbf16, #tpu.memory_space<vmem>>, vector<64x128xbf16>
    %cst_86 = arith.constant dense<0.000000e+00> : vector<1x128xf32>
    %200 = tpu.matmul %198, %199, %cst_86 {dimension_numbers = #tpu.dot_dimension_numbers<[1], [0], [0], [1], [0, 0, 1, 1], [], []>} : vector<1x64xbf16>, vector<64x128xbf16>, vector<1x128xf32> -> vector<1x128xf32>
    %201 = arith.addf %197, %200 : vector<1x128xf32>
    %cst_87 = arith.constant 0.000000e+00 : f32
    %202 = vector.broadcast %cst_87 : f32 to vector<1x128xf32>
    %203 = arith.maximumf %201, %202 : vector<1x128xf32>
    %204 = arith.truncf %203 : vector<1x128xf32> to vector<1x128xbf16>
    %c2496 = arith.constant 2496 : index
    %c0_88 = arith.constant 0 : index
    %205 = vector.load %arg1[%c2496, %c0_88] : memref<2768x128xbf16, #tpu.memory_space<vmem>>, vector<128x128xbf16>
    %cst_89 = arith.constant dense<0.000000e+00> : vector<1x128xf32>
    %206 = tpu.matmul %204, %205, %cst_89 {dimension_numbers = #tpu.dot_dimension_numbers<[1], [0], [0], [1], [0, 0, 1, 1], [], []>} : vector<1x128xbf16>, vector<128x128xbf16>, vector<1x128xf32> -> vector<1x128xf32>
    %207 = arith.addf %195, %206 : vector<1x128xf32>
    %c2232 = arith.constant 2232 : index
    %c0_90 = arith.constant 0 : index
    %208 = vector.load %arg1[%c2232, %c0_90] : memref<2768x128xbf16, #tpu.memory_space<vmem>>, vector<1x128xbf16>
    %209 = arith.extf %208 : vector<1x128xbf16> to vector<1x128xf32>
    %210 = vector.extract_strided_slice %169 {offsets = [0, 0], sizes = [1, 64], strides = [1, 1]} : vector<8x64xbf16> to vector<1x64xbf16>
    %c2144 = arith.constant 2144 : index
    %c0_91 = arith.constant 0 : index
    %211 = vector.load %arg1[%c2144, %c0_91] : memref<2768x128xbf16, #tpu.memory_space<vmem>>, vector<64x128xbf16>
    %cst_92 = arith.constant dense<0.000000e+00> : vector<1x128xf32>
    %212 = tpu.matmul %210, %211, %cst_92 {dimension_numbers = #tpu.dot_dimension_numbers<[1], [0], [0], [1], [0, 0, 1, 1], [], []>} : vector<1x64xbf16>, vector<64x128xbf16>, vector<1x128xf32> -> vector<1x128xf32>
    %213 = arith.addf %209, %212 : vector<1x128xf32>
    %cst_93 = arith.constant 0.000000e+00 : f32
    %214 = vector.broadcast %cst_93 : f32 to vector<1x128xf32>
    %215 = arith.maximumf %213, %214 : vector<1x128xf32>
    %216 = arith.truncf %215 : vector<1x128xf32> to vector<1x128xbf16>
    %c2624 = arith.constant 2624 : index
    %c0_94 = arith.constant 0 : index
    %217 = vector.load %arg1[%c2624, %c0_94] : memref<2768x128xbf16, #tpu.memory_space<vmem>>, vector<128x128xbf16>
    %cst_95 = arith.constant dense<0.000000e+00> : vector<1x128xf32>
    %218 = tpu.matmul %216, %217, %cst_95 {dimension_numbers = #tpu.dot_dimension_numbers<[1], [0], [0], [1], [0, 0, 1, 1], [], []>} : vector<1x128xbf16>, vector<128x128xbf16>, vector<1x128xf32> -> vector<1x128xf32>
    %219 = arith.addf %207, %218 : vector<1x128xf32>
    %c0_96 = arith.constant 0 : index
    %c0_97 = arith.constant 0 : index
    %220 = vector.load %arg2[%c0_96, %c0_97] : memref<1x128xf32, #tpu.memory_space<vmem>>, vector<1x128xf32>
    tpu.vector_store %arg2[%c0_96, %c0_97], %219 {strides = array<i32>} : memref<1x128xf32, #tpu.memory_space<vmem>>, vector<1x128xf32>,
    return
  }
}

</mosaic_0001>

<bundles_post_ra>
// kernel: dqn_forward_pallas.1
= control target key start
LH: loop header
LB: loop body
LE: loop exit
PB: predicated region body
PF: predicated region fallthrough
CT: control target
= control target key end

     0   :  { %vm217_vm0 = vcmask 1040384   ;;  %v4983_v1 = vmov 0   ;;  %vm168_vm1 = vcmask 662528   ;;  %vm422_vm2 = vcmask 523264   ;;  %s5871_s0 = inlined_call_operand.vmem [shape: bf16[81,64], index: 0, kind: input, shape index: {}]   ;;  %s5872_s1 = inlined_call_operand.vmem [shape: bf16[2768,128], index: 1, kind: input, shape index: {}]   ;;  %s5873_s2 = inlined_call_operand.vmem [shape: f32[1,128], index: 2, kind: output, shape index: {}]  }
   0x1   :  { %v4808_v0 = vld [vmem:[%s5871_s0 + $0x28] ss:$0 sps:$4 sm:$0x11]   ;;  %v219_v2 = vsel %vm217_vm0, 65535, %v4983_v1  ;;  %v4809_v4 = vld [vmem:[%s5871_s0 + $0x20] sm:$0xff]   ;;  %v4810_v5 = vld [vmem:[%s5871_s0 + $0x18] sm:$0xff]  }
   0x2   :  { %v221_v3 = vand.u32 %v4808_v0, %v219_v2  ;;  %v4814_v6 = vld [vmem:[%s5872_s1] sm:$0xff]   ;;  %v4811_v7 = vld [vmem:[%s5871_s0 + $0x10] sm:$0xff]   ;;  %v4812_v8 = vld [vmem:[%s5871_s0 + $0x8] sm:$0xff]   ;;  %vm4985_vm3 = vmmov 0   ;;  %vm1227_vm4 = vcmask 261120   ;;  %vm2258_vm5 = vcmask 130048  }
   0x3   :  { %4283 = vmatprep.mubr.msk.bf16.mxu0 %vm168_vm1, %v4814_v6  ;;  %v4813_v9 = vld [vmem:[%s5871_s0] sm:$0xff]   ;;  %v4815_v10 = vld [vmem:[%s5872_s1 + $0x8] sm:$0xff]   ;;  %v4830_v11 = vld [vmem:[%s5872_s1 + $0x98] sm:$0xff]  }
   0x4   :  { %4271 = vmatprep.subr.bf16.mxu0 %v221_v3  ;;  %v4816_v12 = vld [vmem:[%s5872_s1 + $0x10] sm:$0xff]   ;;  %4315 = vmatprep.subr.bf16.mxu1 %v4830_v11  ;;  %v4817_v14 = vld [vmem:[%s5872_s1 + $0x18] sm:$0xff]   ;;  %v4818_v15 = vld [vmem:[%s5872_s1 + $0x20] sm:$0xff]  }
   0x5   :  { %4272 = vmatpush3.bf16.msra.mxu0 %v221_v3  ;;  %v4831_v13 = vld [vmem:[%s5872_s1 + $0x90] sm:$0xff]   ;;  %4316 = vmatpush3.bf16.msra.mxu1 %v4830_v11  ;;  %v4819_v16 = vld [vmem:[%s5872_s1 + $0x28] sm:$0xff]   ;;  %v4821_v18 = vld [vmem:[%s5872_s1 + $0x38] sm:$0xff]  }
   0x6   :  { %4273 = vmatprep.subr.bf16.mxu0 %v4809_v4  ;;  %4317 = vmatprep.subr.bf16.mxu1 %v4831_v13  ;;  %v4820_v17 = vld [vmem:[%s5872_s1 + $0x30] sm:$0xff]   ;;  %v4822_v19 = vld [vmem:[%s5872_s1 + $0x40] sm:$0xff]   ;;  %v4823_v20 = vld [vmem:[%s5872_s1 + $0x48] sm:$0xff]  }
   0x7   :  { %v4824_v21 = vld [vmem:[%s5872_s1 + $0x50] sm:$0xff]   ;;  %v4825_v22 = vld [vmem:[%s5872_s1 + $0x58] sm:$0xff]   ;;  %v4826_v23 = vld [vmem:[%s5872_s1 + $0x60] sm:$0xff]  }
   0x8   :  { %v4827_v24 = vld [vmem:[%s5872_s1 + $0x68] sm:$0xff]   ;;  %v4828_v25 = vld [vmem:[%s5872_s1 + $0x70] sm:$0xff]   ;;  %v4829_v26 = vld [vmem:[%s5872_s1 + $0x78] sm:$0xff]  }
   0x9   :  { %4274 = vmatpush3.bf16.msra.mxu0 %v4809_v4  ;;  %4318 = vmatpush3.bf16.msra.mxu1 %v4831_v13  ;;  %v4832_v27 = vld [vmem:[%s5872_s1 + $0x88] sm:$0xff]   ;;  %v4833_v28 = vld [vmem:[%s5872_s1 + $0x80] sm:$0xff]   ;;  %v4834_v29 = vld [vmem:[%s5872_s1 + $0xb8] sm:$0xff]  }
   0xa   :  { %4275 = vmatprep.subr.bf16.mxu0 %v4810_v5  ;;  %4319 = vmatprep.subr.bf16.mxu1 %v4832_v27  ;;  %v4835_v37 = vld [vmem:[%s5872_s1 + $0xb0] sm:$0xff]   ;;  %v4836_v40 = vld [vmem:[%s5872_s1 + $0xa8] sm:$0xff]   ;;  %v4837_v45 = vld [vmem:[%s5872_s1 + $0xa0] sm:$0xff]  }
   0xb   :  { %v4838_v48 = vld [vmem:[%s5872_s1 + $0xd8] sm:$0xff]   ;;  %v4839_v53 = vld [vmem:[%s5872_s1 + $0xd0] sm:$0xff]   ;;  %v4840_v56 = vld [vmem:[%s5872_s1 + $0xc8] sm:$0xff]  }
   0xc   :  { %v4841_v61 = vld [vmem:[%s5872_s1 + $0xc0] sm:$0xff]   ;;  %v4842_v0 = vld [vmem:[%s5872_s1 + $0xf8] sm:$0xff]  }
   0xd   :  { %4276 = vmatpush3.bf16.msra.mxu0 %v4810_v5  ;;  %4320 = vmatpush3.bf16.msra.mxu1 %v4832_v27  ;;  %v4843_v5 = vld [vmem:[%s5872_s1 + $0xf0] sm:$0xff]   ;;  %v4845_v13 = vld [vmem:[%s5872_s1 + $0xe0] sm:$0xff]  }
   0xe   :  { %4277 = vmatprep.subr.bf16.mxu0 %v4811_v7  ;;  %4321 = vmatprep.subr.bf16.mxu1 %v4833_v28 }
  0x11   :  { %4278 = vmatpush3.bf16.msra.mxu0 %v4811_v7  ;;  %4322 = vmatpush3.bf16.msra.mxu1 %v4833_v28 }
  0x12   :  { %4279 = vmatprep.subr.bf16.mxu0 %v4812_v8  ;;  %4331 = vmatprep.subr.bf16.mxu1 %v4834_v29 }
  0x15   :  { %4280 = vmatpush3.bf16.msra.mxu0 %v4812_v8  ;;  %v4844_v8 = vld [vmem:[%s5872_s1 + $0xe8] sm:$0xff]  }
  0x16   :  { %4281 = vmatprep.subr.bf16.mxu0 %v4813_v9 }
  0x19   :  { %4282 = vmatpush3.bf16.msra.mxu0 %v4813_v9 }
  0x1c   :  { %4284 = vmatmul.mubr.msk.bf16.vlgmr.msra.gmra.mxu0 %vm168_vm1, %v4815_v10 }
  0x1d   :  { %4287 = vmatprep.mubr.msk.bf16.mxu0 %vm168_vm1, %v4816_v12 }
  0x24   :  { %4288 = vmatmul.mubr.msk.bf16.gmra.mxu0 %vm168_vm1, %v4817_v14 }
  0x25   :  { %4291 = vmatprep.mubr.msk.bf16.mxu0 %vm168_vm1, %v4818_v15 }
  0x2c   :  { %4292 = vmatmul.mubr.msk.bf16.gmra.mxu0 %vm168_vm1, %v4819_v16 }
  0x2d   :  { %4295 = vmatprep.mubr.msk.bf16.mxu0 %vm168_vm1, %v4820_v17 }
  0x34   :  { %4296 = vmatmul.mubr.msk.bf16.gmra.mxu0 %vm168_vm1, %v4821_v18 }
  0x35   :  { %4299 = vmatprep.mubr.msk.bf16.mxu0 %vm168_vm1, %v4822_v19 }
  0x3c   :  { %4300 = vmatmul.mubr.msk.bf16.gmra.mxu0 %vm168_vm1, %v4823_v20 }
  0x3d   :  { %4303 = vmatprep.mubr.msk.bf16.mxu0 %vm168_vm1, %v4824_v21 }
  0x44   :  { %4304 = vmatmul.mubr.msk.bf16.gmra.mxu0 %vm168_vm1, %v4825_v22 }
  0x45   :  { %4307 = vmatprep.mubr.msk.bf16.mxu0 %vm168_vm1, %v4826_v23 }
  0x4c   :  { %4308 = vmatmul.mubr.msk.bf16.gmra.mxu0 %vm168_vm1, %v4827_v24 }
  0x4d   :  { %4311 = vmatprep.mubr.msk.bf16.mxu0 %vm168_vm1, %v4828_v25  ;;  %v4846_v25 = vld [vmem:[%s5872_s1 + $0x104] sm:$0xff]  }
  0x54   :  { %4312 = vmatmul.mubr.msk.bf16.gmra.mxu0 %vm168_vm1, %v4829_v26 }
  0xdc   :  { %v4285_v30 = vpop.f32.mrf.mxu0 }
  0xde   :  { %v257_v31 = vpop.f32.mrf.mxu0 }
  0xe0   :  { %v4286_v32 = vpop.f32.mrf.mxu0 }
  0xe1   :  { %v387_v35 = vpack.c.bf16 %v4286_v32, %v4285_v30  ;;  %v4862_v32 = vld [vmem:[%s5872_s1 + $0x19c] sm:$0xff]  }
  0xe2   :  { %v260_v33 = vpop.f32.mrf.mxu0 }
  0xe3   :  { %v386_v34 = vpack.c.bf16 %v260_v33, %v257_v31 }
  0xe4   :  { %v4289_v36 = vpop.f32.mrf.mxu0 }
  0xe5   :  { %4323 = vmatprep.mubr.msk.bf16.mxu1 %vm422_vm2, %v386_v34  ;;  %v4984_v34 = vmov 0.0  }
  0xe6   :  { %v273_v38 = vpop.f32.mrf.mxu0  ;;  %4324 = vmatmul.mubr.msk.bf16.vlgmr.msra.gmra.mxu1 %vm422_vm2, %v387_v35  ;;  %4427 = vmatprep.subr.bf16.mxu0 %v4984_v34  ;;  %v4863_v35 = vld [vmem:[%s5872_s1 + $0x194] sm:$0xff]  }
  0xe7   :  { %4332 = vmatpush3.bf16.msra.mxu1 %v4834_v29  ;;  %4428 = vmatpush3.bf16.msra.mxu0 %v4862_v32 }
  0xe8   :  { %v4290_v39 = vpop.f32.mrf.mxu0  ;;  %4333 = vmatprep.subr.bf16.mxu1 %v4835_v37  ;;  %4429 = vmatprep.subr.bf16.mxu0 %v4984_v34 }
  0xe9   :  { %v389_v43 = vpack.c.bf16 %v4290_v39, %v4289_v36  ;;  %4431 = vmatprep.mubr.msk.bf16.mxu0 %vm4985_vm3, %v4984_v34 }
  0xea   :  { %v276_v41 = vpop.f32.mrf.mxu0 }
  0xeb   :  { %v388_v42 = vpack.c.bf16 %v276_v41, %v273_v38  ;;  %4334 = vmatpush3.bf16.msra.mxu1 %v4835_v37  ;;  %4430 = vmatpush3.bf16.msra.mxu0 %v4863_v35 }
  0xec   :  { %v4293_v44 = vpop.f32.mrf.mxu0  ;;  %4335 = vmatprep.subr.bf16.mxu1 %v4836_v40  ;;  %4435 = vmatprep.subr.bf16.mxu0 %v4984_v34 }
  0xed   :  { %4327 = vmatprep.mubr.msk.bf16.mxu1 %vm422_vm2, %v388_v42 }
  0xee   :  { %v289_v46 = vpop.f32.mrf.mxu0  ;;  %4328 = vmatmul.mubr.msk.bf16.gmra.mxu1 %vm422_vm2, %v389_v43 }
  0xef   :  { %4336 = vmatpush3.bf16.msra.mxu1 %v4836_v40 }
  0xf0   :  { %v4294_v47 = vpop.f32.mrf.mxu0  ;;  %4337 = vmatprep.subr.bf16.mxu1 %v4837_v45 }
  0xf1   :  { %v513_v51 = vpack.c.bf16 %v4294_v47, %v4293_v44 }
  0xf2   :  { %v292_v49 = vpop.f32.mrf.mxu0 }
  0xf3   :  { %v512_v50 = vpack.c.bf16 %v292_v49, %v289_v46  ;;  %4338 = vmatpush3.bf16.msra.mxu1 %v4837_v45  ;;  %v500_v49 = vlaneseq }
  0xf4   :  { %v4297_v52 = vpop.f32.mrf.mxu0  ;;  %4347 = vmatprep.subr.bf16.mxu1 %v4838_v48 }
  0xf5   :  { %4339 = vmatprep.mubr.msk.bf16.mxu1 %vm422_vm2, %v512_v50 }
  0xf6   :  { %v305_v54 = vpop.f32.mrf.mxu0  ;;  %4340 = vmatmul.mubr.msk.bf16.vlgmr.msra.gmra.mxu1 %vm422_vm2, %v513_v51 }
  0xf7   :  { %4348 = vmatpush3.bf16.msra.mxu1 %v4838_v48 }
  0xf8   :  { %v4298_v55 = vpop.f32.mrf.mxu0  ;;  %4349 = vmatprep.subr.bf16.mxu1 %v4839_v53 }
  0xf9   :  { %v515_v59 = vpack.c.bf16 %v4298_v55, %v4297_v52  ;;  %v501_v52 = vshrl.u32 %v500_v49, 7 }
  0xfa   :  { %v308_v57 = vpop.f32.mrf.mxu0 }
  0xfb   :  { %v514_v58 = vpack.c.bf16 %v308_v57, %v305_v54  ;;  %4350 = vmatpush3.bf16.msra.mxu1 %v4839_v53  ;;  %v384_v53 = vld [vmem:[%s5872_s1 + $0x100] sm:$0x1]  ;;  %v5165_v57 = vsub.s32 0, %v501_v52  ;;  %v4850_v52 = vld [vmem:[%s5872_s1 + $0x124] sm:$0xff]  }
  0xfc   :  { %v4301_v60 = vpop.f32.mrf.mxu0  ;;  %4351 = vmatprep.subr.bf16.mxu1 %v4840_v56 }
  0xfd   :  { %4343 = vmatprep.mubr.msk.bf16.mxu1 %vm422_vm2, %v514_v58 }
  0xfe   :  { %v321_v62 = vpop.f32.mrf.mxu0  ;;  %4344 = vmatmul.mubr.msk.bf16.gmra.mxu1 %vm422_vm2, %v515_v59 }
  0xff   :  { %4352 = vmatpush3.bf16.msra.mxu1 %v4840_v56  ;;  %v385_v56 = vunpack.c.l.bf16 %v384_v53  ;;  %v4851_v53 = vld [vmem:[%s5872_s1 + $0x12c] sm:$0xff]  }
 0x100   :  { %v4302_v63 = vpop.f32.mrf.mxu0  ;;  %4353 = vmatprep.subr.bf16.mxu1 %v4841_v61 }
 0x101   :  { %v634_v3 = vpack.c.bf16 %v4302_v63, %v4301_v60  ;;  %v503_v60 = vrot.slane %v385_v56, %v5165_v57  ;;  %v4854_v56 = vld [vmem:[%s5872_s1 + $0x144] sm:$0xff]  }
 0x102   :  { %v324_v1 = vpop.f32.mrf.mxu0 }
 0x103   :  { %v633_v2 = vpack.c.bf16 %v324_v1, %v321_v62  ;;  %4354 = vmatpush3.bf16.msra.mxu1 %v4841_v61 }
 0x104   :  { %v4305_v4 = vpop.f32.mrf.mxu0  ;;  %4363 = vmatprep.subr.bf16.mxu1 %v4842_v0 }
 0x105   :  { %4355 = vmatprep.mubr.msk.bf16.mxu1 %vm422_vm2, %v633_v2 }
 0x106   :  { %v337_v6 = vpop.f32.mrf.mxu0  ;;  %4356 = vmatmul.mubr.msk.bf16.vlgmr.msra.gmra.mxu1 %vm422_vm2, %v634_v3 }
 0x107   :  { %4364 = vmatpush3.bf16.msra.mxu1 %v4842_v0 }
 0x108   :  { %v4306_v7 = vpop.f32.mrf.mxu0  ;;  %4365 = vmatprep.subr.bf16.mxu1 %v4843_v5 }
 0x109   :  { %v636_v11 = vpack.c.bf16 %v4306_v7, %v4305_v4 }
 0x10a   :  { %v340_v9 = vpop.f32.mrf.mxu0 }
 0x10b   :  { %v635_v10 = vpack.c.bf16 %v340_v9, %v337_v6  ;;  %4366 = vmatpush3.bf16.msra.mxu1 %v4843_v5 }
 0x10c   :  { %v4309_v12 = vpop.f32.mrf.mxu0  ;;  %4367 = vmatprep.subr.bf16.mxu1 %v4844_v8 }
 0x10d   :  { %4359 = vmatprep.mubr.msk.bf16.mxu1 %vm422_vm2, %v635_v10 }
 0x10e   :  { %v353_v14 = vpop.f32.mrf.mxu0  ;;  %4360 = vmatmul.mubr.msk.bf16.gmra.mxu1 %vm422_vm2, %v636_v11 }
 0x10f   :  { %4368 = vmatpush3.bf16.msra.mxu1 %v4844_v8 }
 0x110   :  { %v4310_v15 = vpop.f32.mrf.mxu0  ;;  %4369 = vmatprep.subr.bf16.mxu1 %v4845_v13 }
 0x111   :  { %v755_v18 = vpack.c.bf16 %v4310_v15, %v4309_v12 }
 0x112   :  { %v356_v16 = vpop.f32.mrf.mxu0 }
 0x113   :  { %v754_v17 = vpack.c.bf16 %v356_v16, %v353_v14  ;;  %4370 = vmatpush3.bf16.msra.mxu1 %v4845_v13 }
 0x114   :  { %v4313_v19 = vpop.f32.mrf.mxu0 }
 0x115   :  { %4371 = vmatprep.mubr.msk.bf16.mxu1 %vm422_vm2, %v754_v17 }
 0x116   :  { %v369_v20 = vpop.f32.mrf.mxu0  ;;  %4372 = vmatmul.mubr.msk.bf16.vlgmr.msra.gmra.mxu1 %vm422_vm2, %v755_v18 }
 0x118   :  { %v4314_v21 = vpop.f32.mrf.mxu0 }
 0x119   :  { %v757_v24 = vpack.c.bf16 %v4314_v21, %v4313_v19 }
 0x11a   :  { %v372_v22 = vpop.f32.mrf.mxu0 }
 0x11b   :  { %v756_v23 = vpack.c.bf16 %v372_v22, %v369_v20 }
 0x11d   :  { %4375 = vmatprep.mubr.msk.bf16.mxu1 %vm422_vm2, %v756_v23 }
 0x11e   :  { %4376 = vmatmul.mubr.msk.bf16.gmra.mxu1 %vm422_vm2, %v757_v24 }
 0x11f   :  { %4387 = vmatprep.mubr.msk.bf16.mxu1 %vm422_vm2, %v4846_v25 }
 0x1a6   :  { %v4325_v26 = vpop.f32.mrf.mxu1 }
 0x1a7   :  { %v506_v9 = vadd.f32 %v4325_v26, %v503_v60 }
 0x1a8   :  { %v5151_v27 = vpop.f32.mrf.mxu1 }
 0x1a9   :  { %v504_v23 = vadd.f32 %v503_v60, %v5151_v27 }
 0x1aa   :  { %v4326_v28 = vpop.f32.mrf.mxu1 }
 0x1ab   :  { %v507_v3 = vadd.f32 %v4326_v28, %v503_v60 }
 0x1ac   :  { %v472_v29 = vpop.f32.mrf.mxu1 }
 0x1ad   :  { %v505_v16 = vadd.f32 %v503_v60, %v472_v29 }
 0x1ae   :  { %v4329_v30 = vpop.f32.mrf.mxu1 }
 0x1af   :  { %v510_v62 = vadd.f32 %v4329_v30, %v503_v60 }
 0x1b0   :  { %v485_v31 = vpop.f32.mrf.mxu1 }
 0x1b1   :  { %v508_v0 = vadd.f32 %v503_v60, %v485_v31 }
 0x1b2   :  { %v4330_v33 = vpop.f32.mrf.mxu1 }
 0x1b3   :  { %v511_v1 = vadd.f32 %v4330_v33, %v503_v60 }
 0x1b4   :  { %v488_v36 = vpop.f32.mrf.mxu1 }
 0x1b5   :  { %v509_v5 = vadd.f32 %v503_v60, %v488_v36  ;;  %v4857_v60 = vld [vmem:[%s5872_s1 + $0x15c] sm:$0xff]  }
 0x1b6   :  { %v4341_v37 = vpop.f32.mrf.mxu1 }
 0x1b7   :  { %v627_v17 = vadd.f32 %v4341_v37, %v506_v9 }
 0x1b8   :  { %v594_v38 = vpop.f32.mrf.mxu1 }
 0x1b9   :  { %v625_v33 = vadd.f32 %v594_v38, %v504_v23  ;;  %v4870_v23 = vld [vmem:[%s5872_s1 + $0x1cc] sm:$0xff]  }
 0x1ba   :  { %v4342_v39 = vpop.f32.mrf.mxu1 }
 0x1bb   :  { %v628_v10 = vadd.f32 %v4342_v39, %v507_v3 }
 0x1bc   :  { %v597_v40 = vpop.f32.mrf.mxu1 }
 0x1bd   :  { %v626_v24 = vadd.f32 %v597_v40, %v505_v16  ;;  %v4868_v16 = vld [vmem:[%s5872_s1 + $0x1bc] sm:$0xff]  }
 0x1be   :  { %v4345_v41 = vpop.f32.mrf.mxu1 }
 0x1bf   :  { %v631_v2 = vadd.f32 %v4345_v41, %v510_v62  ;;  %v4859_v62 = vld [vmem:[%s5872_s1 + $0x16c] sm:$0xff]  }
 0x1c0   :  { %v610_v42 = vpop.f32.mrf.mxu1 }
 0x1c1   :  { %v629_v6 = vadd.f32 %v610_v42, %v508_v0  ;;  %v4861_v0 = vld [vmem:[%s5872_s1 + $0x17c] sm:$0xff]  }
 0x1c2   :  { %v4346_v43 = vpop.f32.mrf.mxu1 }
 0x1c3   :  { %v632_v7 = vadd.f32 %v4346_v43, %v511_v1  ;;  %v4865_v1 = vld [vmem:[%s5872_s1 + $0x184] sm:$0xff]  }
 0x1c4   :  { %v613_v44 = vpop.f32.mrf.mxu1 }
 0x1c5   :  { %v630_v12 = vadd.f32 %v613_v44, %v509_v5  ;;  %v4866_v5 = vld [vmem:[%s5872_s1 + $0x1ac] sm:$0xff]  }
 0x1c6   :  { %v4357_v45 = vpop.f32.mrf.mxu1 }
 0x1c7   :  { %v748_v25 = vadd.f32 %v4357_v45, %v627_v17 }
 0x1c8   :  { %v715_v46 = vpop.f32.mrf.mxu1 }
 0x1c9   :  { %v746_v41 = vadd.f32 %v715_v46, %v625_v33  ;;  %v4847_v46 = vld [vmem:[%s5872_s1 + $0x10c] sm:$0xff]  }
 0x1ca   :  { %v4358_v47 = vpop.f32.mrf.mxu1 }
 0x1cb   :  { %v749_v19 = vadd.f32 %v4358_v47, %v628_v10 }
 0x1cc   :  { %v718_v48 = vpop.f32.mrf.mxu1 }
 0x1cd   :  { %v747_v35 = vadd.f32 %v718_v48, %v626_v24  ;;  %v4848_v48 = vld [vmem:[%s5872_s1 + $0x114] sm:$0xff]  }
 0x1ce   :  { %v4361_v50 = vpop.f32.mrf.mxu1 }
 0x1cf   :  { %v752_v8 = vadd.f32 %v4361_v50, %v631_v2  ;;  %v4864_v50 = vld [vmem:[%s5872_s1 + $0x18c] sm:$0xff]  }
 0x1d0   :  { %v731_v51 = vpop.f32.mrf.mxu1 }
 0x1d1   :  { %v750_v13 = vadd.f32 %v731_v51, %v629_v6  ;;  %v4849_v51 = vld [vmem:[%s5872_s1 + $0x11c] sm:$0xff]  }
 0x1d2   :  { %v4362_v54 = vpop.f32.mrf.mxu1 }
 0x1d3   :  { %v753_v14 = vadd.f32 %v4362_v54, %v632_v7  ;;  %v4852_v54 = vld [vmem:[%s5872_s1 + $0x134] sm:$0xff]  }
 0x1d4   :  { %v734_v55 = vpop.f32.mrf.mxu1 }
 0x1d5   :  { %v751_v20 = vadd.f32 %v734_v55, %v630_v12  ;;  %v4853_v55 = vld [vmem:[%s5872_s1 + $0x13c] sm:$0xff]  }
 0x1d6   :  { %v4373_v58 = vpop.f32.mrf.mxu1 }
 0x1d7   :  { %v869_v36 = vadd.f32 %v4373_v58, %v748_v25  ;;  %v4855_v58 = vld [vmem:[%s5872_s1 + $0x14c] sm:$0xff]  }
 0x1d8   :  { %v836_v59 = vpop.f32.mrf.mxu1 }
 0x1d9   :  { %v877_v27 = vmax.f32 %v869_v36, 0.0  ;;  %v867_v40 = vadd.f32 %v836_v59, %v746_v41  ;;  %v4856_v59 = vld [vmem:[%s5872_s1 + $0x154] sm:$0xff]  }
 0x1da   :  { %v4374_v61 = vpop.f32.mrf.mxu1  ;;  %v4873_v36 = vld [vmem:[%s5872_s1 + $0x1d4] sm:$0xff]  }
 0x1db   :  { %v870_v30 = vadd.f32 %v4374_v61, %v749_v19  ;;  %v875_v49 = vmax.f32 %v867_v40, 0.0  ;;  %v4858_v61 = vld [vmem:[%s5872_s1 + $0x164] sm:$0xff]  }
 0x1dc   :  { %v839_v63 = vpop.f32.mrf.mxu1  ;;  %v4876_v40 = vld [vmem:[%s5872_s1 + $0x1e4] sm:$0xff]  }
 0x1dd   :  { %v878_v42 = vmax.f32 %v870_v30, 0.0  ;;  %v868_v43 = vadd.f32 %v839_v63, %v747_v35  ;;  %v4860_v63 = vld [vmem:[%s5872_s1 + $0x174] sm:$0xff]  }
 0x1de   :  { %v4377_v4 = vpop.f32.mrf.mxu1 }
 0x1df   :  { %v873_v15 = vadd.f32 %v4377_v4, %v752_v8  ;;  %v884_v45 = vpack.c.bf16 %v878_v42, %v877_v27  ;;  %v876_v47 = vmax.f32 %v868_v43, 0.0  ;;  %v4875_v8 = vld [vmem:[%s5872_s1 + $0x20c] sm:$0xff]  }
 0x1e0   :  { %v852_v11 = vpop.f32.mrf.mxu1 }
 0x1e1   :  { %v871_v21 = vadd.f32 %v852_v11, %v750_v13  ;;  %v881_v26 = vmax.f32 %v873_v15, 0.0  ;;  %v883_v38 = vpack.c.bf16 %v876_v47, %v875_v49  ;;  %v4867_v11 = vld [vmem:[%s5872_s1 + $0x1a4] sm:$0xff]  }
 0x1e2   :  { %v4378_v18 = vpop.f32.mrf.mxu1  ;;  %v4877_v13 = vld [vmem:[%s5872_s1 + $0x204] sm:$0xff]  }
 0x1e3   :  { %v874_v22 = vadd.f32 %v4378_v18, %v753_v14  ;;  %v879_v39 = vmax.f32 %v871_v21, 0.0  ;;  %v4881_v47 = vld [vmem:[%s5872_s1 + $0x224] sm:$0xff]  }
 0x1e4   :  { %v855_v28 = vpop.f32.mrf.mxu1 }
 0x1e5   :  { %v882_v31 = vmax.f32 %v874_v22, 0.0  ;;  %v872_v32 = vadd.f32 %v855_v28, %v751_v20  ;;  %v4869_v20 = vld [vmem:[%s5872_s1 + $0x1b4] sm:$0xff]   ;;  %v4871_v28 = vld [vmem:[%s5872_s1 + $0x1c4] sm:$0xff]  }
 0x1e7   :  { %v886_v29 = vpack.c.bf16 %v882_v31, %v881_v26  ;;  %v880_v37 = vmax.f32 %v872_v32, 0.0  ;;  %v4872_v31 = vld [vmem:[%s5872_s1 + $0x1dc] sm:$0xff]  }
 0x1e9   :  { %v885_v44 = vpack.c.bf16 %v880_v37, %v879_v39  ;;  %4379 = vmatprep.subr.bf16.mxu1 %v886_v29  ;;  %v4874_v37 = vld [vmem:[%s5872_s1 + $0x1ec] sm:$0xff]  }
 0x1ea   :  { %4380 = vmatpush3.bf16.msra.mxu1 %v886_v29 }
 0x1eb   :  { %4381 = vmatprep.subr.bf16.mxu1 %v885_v44 }
 0x1ee   :  { %4382 = vmatpush3.bf16.msra.mxu1 %v885_v44  ;;  %v4879_v44 = vld [vmem:[%s5872_s1 + $0x22c] sm:$0xff]  }
 0x1ef   :  { %4383 = vmatprep.subr.bf16.mxu1 %v884_v45 }
 0x1f2   :  { %4384 = vmatpush3.bf16.msra.mxu1 %v884_v45 }
 0x1f3   :  { %4385 = vmatprep.subr.bf16.mxu1 %v883_v38 }
 0x1f6   :  { %4386 = vmatpush3.bf16.msra.mxu1 %v883_v38  ;;  %v4878_v38 = vld [vmem:[%s5872_s1 + $0x1fc] sm:$0xff]  }
 0x1f7   :  { %4419 = vmatprep.subr.bf16.mxu1 %v4984_v34 }
 0x1f9   :  { %4388 = vmatmul.mubr.msk.bf16.vlgmr.msra.gmra.mxu1 %vm422_vm2, %v4847_v46 }
 0x1fa   :  { %4391 = vmatprep.mubr.msk.bf16.mxu1 %vm422_vm2, %v4848_v48  ;;  %4420 = vmatpush3.bf16.msra.mxu1 %v4864_v50 }
 0x1fb   :  { %4421 = vmatprep.subr.bf16.mxu1 %v4984_v34 }
 0x1fe   :  { %4422 = vmatpush3.bf16.msra.mxu1 %v4865_v1 }
 0x1ff   :  { %4483 = vmatprep.subr.bf16.mxu1 %v4984_v34 }
 0x201   :  { %4392 = vmatmul.mubr.msk.bf16.gmra.mxu1 %vm422_vm2, %v4849_v51 }
 0x202   :  { %4395 = vmatprep.mubr.msk.bf16.mxu1 %vm422_vm2, %v4850_v52  ;;  %v4883_v52 = vld [vmem:[%s5872_s1 + $0x24c] sm:$0xff]  }
 0x209   :  { %4396 = vmatmul.mubr.msk.bf16.gmra.mxu1 %vm422_vm2, %v4851_v53  ;;  %v4880_v53 = vld [vmem:[%s5872_s1 + $0x1f4] sm:$0xff]  }
 0x20a   :  { %4399 = vmatprep.mubr.msk.bf16.mxu1 %vm422_vm2, %v4852_v54 }
 0x211   :  { %4400 = vmatmul.mubr.msk.bf16.gmra.mxu1 %vm422_vm2, %v4853_v55 }
 0x212   :  { %4403 = vmatprep.mubr.msk.bf16.mxu1 %vm422_vm2, %v4854_v56  ;;  %v4885_v56 = vld [vmem:[%s5872_s1 + $0x244] sm:$0xff]  }
 0x219   :  { %4404 = vmatmul.mubr.msk.bf16.gmra.mxu1 %vm422_vm2, %v4855_v58  ;;  %v4882_v58 = vld [vmem:[%s5872_s1 + $0x21c] sm:$0xff]  }
 0x21a   :  { %4407 = vmatprep.mubr.msk.bf16.mxu1 %vm422_vm2, %v4856_v59 }
 0x221   :  { %4408 = vmatmul.mubr.msk.bf16.gmra.mxu1 %vm422_vm2, %v4857_v60 }
 0x222   :  { %4411 = vmatprep.mubr.msk.bf16.mxu1 %vm422_vm2, %v4858_v61 }
 0x229   :  { %4412 = vmatmul.mubr.msk.bf16.gmra.mxu1 %vm422_vm2, %v4859_v62 }
 0x22a   :  { %4415 = vmatprep.mubr.msk.bf16.mxu1 %vm422_vm2, %v4860_v63  ;;  %v4887_v63 = vld [vmem:[%s5872_s1 + $0x26c] sm:$0xff]  }
 0x231   :  { %4416 = vmatmul.mubr.msk.bf16.gmra.mxu1 %vm422_vm2, %v4861_v0  ;;  %v4884_v0 = vld [vmem:[%s5872_s1 + $0x214] sm:$0xff]  }
 0x232   :  { %4423 = vmatprep.mubr.msk.bf16.mxu1 %vm4985_vm3, %v4984_v34 }
 0x2b9   :  { %v4389_v2 = vpop.f32.mrf.mxu1 }
 0x2bb   :  { %v1081_v3 = vpop.f32.mrf.mxu1 }
 0x2bd   :  { %v4390_v4 = vpop.f32.mrf.mxu1 }
 0x2be   :  { %v1278_v6 = vpack.c.bf16 %v4390_v4, %v4389_v2  ;;  %v4886_v4 = vld [vmem:[%s5872_s1 + $0x23c] sm:$0xff]  }
 0x2bf   :  { %v1084_v7 = vpop.f32.mrf.mxu1 }
 0x2c0   :  { %v1210_v9 = vpack.c.bf16 %v1084_v7, %v1081_v3  ;;  %4432 = vmatmul.mubr.msk.bf16.vlgmr.msra.gmra.mxu0 %vm1227_vm4, %v1278_v6  ;;  %v4889_v3 = vld [vmem:[%s5872_s1 + $0x264] sm:$0xff]  }
 0x2c1   :  { %v4393_v10 = vpop.f32.mrf.mxu1  ;;  %4436 = vmatpush3.bf16.msra.mxu0 %v4866_v5  ;;  %4439 = vmatprep.mubr.msk.bf16.mxu0 %vm4985_vm3, %v4984_v34 }
 0x2c2   :  { %4424 = vmatmul.mubr.msk.bf16.vlgmr.msra.gmra.mxu1 %vm1227_vm4, %v1210_v9  ;;  %4437 = vmatprep.subr.bf16.mxu0 %v4984_v34  ;;  %v4890_v9 = vld [vmem:[%s5872_s1 + $0x25c] sm:$0xff]  }
 0x2c3   :  { %v1097_v12 = vpop.f32.mrf.mxu1  ;;  %4484 = vmatpush3.bf16.msra.mxu1 %v4875_v8  ;;  %4487 = vmatprep.mubr.msk.bf16.mxu1 %vm4985_vm3, %v4984_v34  ;;  %v4888_v8 = vld [vmem:[%s5872_s1 + $0x234] sm:$0xff]  }
 0x2c4   :  { %4485 = vmatprep.subr.bf16.mxu1 %v4984_v34 }
 0x2c5   :  { %v4394_v14 = vpop.f32.mrf.mxu1  ;;  %4438 = vmatpush3.bf16.msra.mxu0 %v4867_v11  ;;  %v4891_v11 = vld [vmem:[%s5872_s1 + $0x254] sm:$0xff]  }
 0x2c6   :  { %4443 = vmatprep.subr.bf16.mxu0 %v4984_v34  ;;  %v1404_v24 = vpack.c.bf16 %v4394_v14, %v4393_v10  ;;  %v4893_v14 = vld [vmem:[%s5872_s1 + $0x274] sm:$0xff]  }
 0x2c7   :  { %v1100_v15 = vpop.f32.mrf.mxu1  ;;  %4486 = vmatpush3.bf16.msra.mxu1 %v4877_v13 }
 0x2c8   :  { %v1341_v17 = vpack.c.bf16 %v1100_v15, %v1097_v12  ;;  %4499 = vmatprep.subr.bf16.mxu1 %v4984_v34  ;;  %v4892_v12 = vld [vmem:[%s5872_s1 + $0x27c] sm:$0xff]  }
 0x2c9   :  { %v4397_v18 = vpop.f32.mrf.mxu1 }
 0x2ca   :  { %4440 = vmatmul.mubr.msk.bf16.vlgmr.msra.gmra.mxu0 %vm1227_vm4, %v1341_v17  ;;  %v4900_v17 = vld [vmem:[%s5872_s1 + $0x2c4] sm:$0xff]  }
 0x2cb   :  { %4444 = vmatpush3.bf16.msra.mxu0 %v4868_v16  ;;  %v1113_v19 = vpop.f32.mrf.mxu1  ;;  %4447 = vmatprep.mubr.msk.bf16.mxu0 %vm4985_vm3, %v4984_v34 }
 0x2cc   :  { %4445 = vmatprep.subr.bf16.mxu0 %v4984_v34 }
 0x2cd   :  { %v4398_v21 = vpop.f32.mrf.mxu1 }
 0x2ce   :  { %v1530_v42 = vpack.c.bf16 %v4398_v21, %v4397_v18 }
 0x2cf   :  { %4446 = vmatpush3.bf16.msra.mxu0 %v4869_v20  ;;  %v1116_v22 = vpop.f32.mrf.mxu1  ;;  %v4901_v20 = vld [vmem:[%s5872_s1 + $0x2bc] sm:$0xff]  }
 0x2d0   :  { %4451 = vmatprep.subr.bf16.mxu0 %v4984_v34  ;;  %v1467_v33 = vpack.c.bf16 %v1116_v22, %v1113_v19 }
 0x2d1   :  { %v5278_v25 = vpop.f32.mrf.mxu1 }
 0x2d2   :  { %4448 = vmatmul.mubr.msk.bf16.vlgmr.msra.gmra.mxu0 %vm1227_vm4, %v1404_v24 }
 0x2d3   :  { %4452 = vmatpush3.bf16.msra.mxu0 %v4870_v23  ;;  %4455 = vmatprep.mubr.msk.bf16.mxu0 %vm4985_vm3, %v4984_v34  ;;  %v1129_v30 = vpop.f32.mrf.mxu1 }
 0x2d4   :  { %4453 = vmatprep.subr.bf16.mxu0 %v4984_v34 }
 0x2d5   :  { %v5287_v26 = vpop.f32.mrf.mxu1 }
 0x2d6   :  { %v1656_v60 = vpack.c.bf16 %v5287_v26, %v5278_v25  ;;  %v4902_v25 = vld [vmem:[%s5872_s1 + $0x2b4] sm:$0xff]   ;;  %v4904_v26 = vld [vmem:[%s5872_s1 + $0x2ac] sm:$0xff]  }
 0x2d7   :  { %4454 = vmatpush3.bf16.msra.mxu0 %v4871_v28  ;;  %v1132_v32 = vpop.f32.mrf.mxu1 }
 0x2d8   :  { %4459 = vmatprep.subr.bf16.mxu0 %v4984_v34  ;;  %v1593_v48 = vpack.c.bf16 %v1132_v32, %v1129_v30 }
 0x2d9   :  { %v5293_v35 = vpop.f32.mrf.mxu1 }
 0x2da   :  { %4456 = vmatmul.mubr.msk.bf16.vlgmr.msra.gmra.mxu0 %vm1227_vm4, %v1467_v33 }
 0x2db   :  { %4460 = vmatpush3.bf16.msra.mxu0 %v4872_v31  ;;  %4463 = vmatprep.mubr.msk.bf16.mxu0 %vm4985_vm3, %v4984_v34  ;;  %v1145_v39 = vpop.f32.mrf.mxu1 }
 0x2dc   :  { %4461 = vmatprep.subr.bf16.mxu0 %v4984_v34 }
 0x2dd   :  { %v5302_v29 = vpop.f32.mrf.mxu1 }
 0x2de   :  { %v1782_v6 = vpack.c.bf16 %v5302_v29, %v5293_v35 }
 0x2df   :  { %4462 = vmatpush3.bf16.msra.mxu0 %v4873_v36  ;;  %v1148_v41 = vpop.f32.mrf.mxu1 }
 0x2e0   :  { %4467 = vmatprep.subr.bf16.mxu0 %v4984_v34  ;;  %v1719_v43 = vpack.c.bf16 %v1148_v41, %v1145_v39 }
 0x2e1   :  { %v5311_v27 = vpop.f32.mrf.mxu1 }
 0x2e2   :  { %4464 = vmatmul.mubr.msk.bf16.vlgmr.msra.gmra.mxu0 %vm1227_vm4, %v1530_v42  ;;  %4488 = vmatmul.mubr.msk.bf16.vlgmr.msra.gmra.mxu1 %vm1227_vm4, %v1719_v43 }
 0x2e3   :  { %4468 = vmatpush3.bf16.msra.mxu0 %v4874_v37  ;;  %4471 = vmatprep.mubr.msk.bf16.mxu0 %vm4985_vm3, %v4984_v34  ;;  %v1161_v45 = vpop.f32.mrf.mxu1 }
 0x2e4   :  { %4469 = vmatprep.subr.bf16.mxu0 %v4984_v34  ;;  %4500 = vmatpush3.bf16.msra.mxu1 %v4879_v44  ;;  %v1208_v44 = vld [vmem:[%s5872_s1 + $0x284] sm:$0x1] }
 0x2e5   :  { %v5324_v49 = vpop.f32.mrf.mxu1  ;;  %4501 = vmatprep.subr.bf16.mxu1 %v4984_v34  ;;  %4503 = vmatprep.mubr.msk.bf16.mxu1 %vm4985_vm3, %v4984_v34 }
 0x2e6   :  { %v1908_v10 = vpack.c.bf16 %v5324_v49, %v5311_v27  ;;  %v1209_v49 = vunpack.c.l.bf16 %v1208_v44 }
 0x2e7   :  { %4470 = vmatpush3.bf16.msra.mxu0 %v4876_v40  ;;  %v1164_v46 = vpop.f32.mrf.mxu1 }
 0x2e8   :  { %4475 = vmatprep.subr.bf16.mxu0 %v4984_v34  ;;  %v1845_v50 = vpack.c.bf16 %v1164_v46, %v1161_v45  ;;  %4502 = vmatpush3.bf16.msra.mxu1 %v4881_v47 }
 0x2e9   :  { %v5333_v51 = vpop.f32.mrf.mxu1  ;;  %4515 = vmatprep.subr.bf16.mxu1 %v4984_v34 }
 0x2ea   :  { %4472 = vmatmul.mubr.msk.bf16.vlgmr.msra.gmra.mxu0 %vm1227_vm4, %v1593_v48 }
 0x2eb   :  { %4476 = vmatpush3.bf16.msra.mxu0 %v4878_v38  ;;  %4479 = vmatprep.mubr.msk.bf16.mxu0 %vm4985_vm3, %v4984_v34  ;;  %v1177_v54 = vpop.f32.mrf.mxu1 }
 0x2ec   :  { %4477 = vmatprep.subr.bf16.mxu0 %v4984_v34  ;;  %4504 = vmatmul.mubr.msk.bf16.vlgmr.msra.gmra.mxu1 %vm1227_vm4, %v1845_v50 }
 0x2ed   :  { %4516 = vmatpush3.bf16.msra.mxu1 %v4883_v52  ;;  %v4414_v55 = vpop.f32.mrf.mxu1  ;;  %4519 = vmatprep.mubr.msk.bf16.mxu1 %vm4985_vm3, %v4984_v34 }
 0x2ee   :  { %4517 = vmatprep.subr.bf16.mxu1 %v4984_v34  ;;  %v2034_v13 = vpack.c.bf16 %v4414_v55, %v5333_v51  ;;  %v1275_v51 = vrot.slane %v1209_v49, %v5165_v57 }
 0x2ef   :  { %4478 = vmatpush3.bf16.msra.mxu0 %v4880_v53  ;;  %v1180_v59 = vpop.f32.mrf.mxu1 }
 0x2f0   :  { %4491 = vmatprep.subr.bf16.mxu0 %v4984_v34  ;;  %v1971_v61 = vpack.c.bf16 %v1180_v59, %v1177_v54 }
 0x2f1   :  { %4518 = vmatpush3.bf16.msra.mxu1 %v4885_v56  ;;  %v4417_v62 = vpop.f32.mrf.mxu1 }
 0x2f2   :  { %4480 = vmatmul.mubr.msk.bf16.vlgmr.msra.gmra.mxu0 %vm1227_vm4, %v1656_v60  ;;  %4531 = vmatprep.subr.bf16.mxu1 %v4984_v34 }
 0x2f3   :  { %4492 = vmatpush3.bf16.msra.mxu0 %v4882_v58  ;;  %4495 = vmatprep.mubr.msk.bf16.mxu0 %vm4985_vm3, %v4984_v34  ;;  %v1193_v1 = vpop.f32.mrf.mxu1 }
 0x2f4   :  { %4493 = vmatprep.subr.bf16.mxu0 %v4984_v34  ;;  %4520 = vmatmul.mubr.msk.bf16.vlgmr.msra.gmra.mxu1 %vm1227_vm4, %v1971_v61 }
 0x2f5   :  { %4532 = vmatpush3.bf16.msra.mxu1 %v4887_v63  ;;  %v4418_v2 = vpop.f32.mrf.mxu1  ;;  %4535 = vmatprep.mubr.msk.bf16.mxu1 %vm4985_vm3, %v4984_v34 }
 0x2f6   :  { %4533 = vmatprep.subr.bf16.mxu1 %v4984_v34  ;;  %v2160_v15 = vpack.c.bf16 %v4418_v2, %v4417_v62 }
 0x2f7   :  { %4494 = vmatpush3.bf16.msra.mxu0 %v4884_v0  ;;  %v1196_v5 = vpop.f32.mrf.mxu1 }
 0x2f8   :  { %4507 = vmatprep.subr.bf16.mxu0 %v4984_v34  ;;  %v2097_v7 = vpack.c.bf16 %v1196_v5, %v1193_v1 }
 0x2f9   :  { %4534 = vmatpush3.bf16.msra.mxu1 %v4889_v3 }
 0x2fa   :  { %4496 = vmatmul.mubr.msk.bf16.vlgmr.msra.gmra.mxu0 %vm1227_vm4, %v1782_v6  ;;  %4547 = vmatprep.subr.bf16.mxu1 %v4984_v34 }
 0x2fb   :  { %4508 = vmatpush3.bf16.msra.mxu0 %v4886_v4  ;;  %4511 = vmatprep.mubr.msk.bf16.mxu0 %vm4985_vm3, %v4984_v34 }
 0x2fc   :  { %4509 = vmatprep.subr.bf16.mxu0 %v4984_v34  ;;  %4536 = vmatmul.mubr.msk.bf16.vlgmr.msra.gmra.mxu1 %vm1227_vm4, %v2097_v7 }
 0x2fd   :  { %4549 = vmatprep.mubr.msk.bf16.mxu1 %vm4985_vm3, %v4984_v34 }
 0x2ff   :  { %4510 = vmatpush3.bf16.msra.mxu0 %v4888_v8 }
 0x300   :  { %4523 = vmatprep.subr.bf16.mxu0 %v4984_v34 }
 0x302   :  { %4512 = vmatmul.mubr.msk.bf16.vlgmr.msra.gmra.mxu0 %vm1227_vm4, %v1908_v10 }
 0x303   :  { %4524 = vmatpush3.bf16.msra.mxu0 %v4890_v9  ;;  %4527 = vmatprep.mubr.msk.bf16.mxu0 %vm4985_vm3, %v4984_v34 }
 0x304   :  { %4525 = vmatprep.subr.bf16.mxu0 %v4984_v34 }
 0x307   :  { %4526 = vmatpush3.bf16.msra.mxu0 %v4891_v11 }
 0x308   :  { %4539 = vmatprep.subr.bf16.mxu0 %v4984_v34 }
 0x30a   :  { %4528 = vmatmul.mubr.msk.bf16.vlgmr.msra.gmra.mxu0 %vm1227_vm4, %v2034_v13 }
 0x30b   :  { %4540 = vmatpush3.bf16.msra.mxu0 %v4892_v12  ;;  %4543 = vmatprep.mubr.msk.bf16.mxu0 %vm4985_vm3, %v4984_v34 }
 0x30c   :  { %4541 = vmatprep.subr.bf16.mxu0 %v4984_v34 }
 0x30f   :  { %4542 = vmatpush3.bf16.msra.mxu0 %v4893_v14 }
 0x310   :  { %4569 = vmatprep.subr.bf16.mxu0 %v4984_v34 }
 0x312   :  { %4544 = vmatmul.mubr.msk.bf16.vlgmr.msra.gmra.mxu0 %vm1227_vm4, %v2160_v15 }
 0x313   :  { %4577 = vmatprep.mubr.msk.bf16.mxu0 %vm4985_vm3, %v4984_v34  ;;  %4570 = vmatpush3.bf16.msra.mxu0 %v4900_v17 }
 0x314   :  { %4571 = vmatprep.subr.bf16.mxu0 %v4984_v34 }
 0x317   :  { %4572 = vmatpush3.bf16.msra.mxu0 %v4901_v20 }
 0x318   :  { %4573 = vmatprep.subr.bf16.mxu0 %v4984_v34 }
 0x31b   :  { %4574 = vmatpush3.bf16.msra.mxu0 %v4902_v25 }
 0x31c   :  { %4575 = vmatprep.subr.bf16.mxu0 %v4984_v34 }
 0x31f   :  { %4576 = vmatpush3.bf16.msra.mxu0 %v4904_v26 }
 0x320   :  { %4581 = vmatprep.subr.bf16.mxu0 %v4984_v34 }
 0x380   :  { %v1332_v16 = vpop.f32.mrf.mxu0 }
 0x382   :  { %v1265_v18 = vpop.f32.mrf.mxu1  ;;  %v4433_v19 = vpop.f32.mrf.mxu0 }
 0x383   :  { %v1276_v55 = vadd.f32 %v1275_v51, %v1265_v18 }
 0x384   :  { %v4425_v21 = vpop.f32.mrf.mxu1  ;;  %v1335_v22 = vpop.f32.mrf.mxu0 }
 0x385   :  { %v1339_v62 = vadd.f32 %v1332_v16, %v1276_v55 }
 0x386   :  { %v1268_v23 = vpop.f32.mrf.mxu1  ;;  %v4434_v24 = vpop.f32.mrf.mxu0 }
 0x387   :  { %v1277_v59 = vadd.f32 %v1275_v51, %v1268_v23 }
 0x388   :  { %v4426_v28 = vpop.f32.mrf.mxu1 }
 0x389   :  { %v1340_v2 = vadd.f32 %v1335_v22, %v1277_v59 }
 0x38a   :  { %v1395_v30 = vpop.f32.mrf.mxu0 }
 0x38b   :  { %v1402_v1 = vadd.f32 %v1395_v30, %v1339_v62  ;;  %v4894_v62 = vld [vmem:[%s5872_s1 + $0x288] sm:$0xff]  }
 0x38c   :  { %v4441_v31 = vpop.f32.mrf.mxu0 }
 0x38e   :  { %v1398_v32 = vpop.f32.mrf.mxu0 }
 0x38f   :  { %v1403_v5 = vadd.f32 %v1398_v32, %v1340_v2  ;;  %v4896_v2 = vld [vmem:[%s5872_s1 + $0x298] sm:$0xff]  }
 0x390   :  { %v4442_v33 = vpop.f32.mrf.mxu0 }
 0x392   :  { %v1458_v35 = vpop.f32.mrf.mxu0 }
 0x393   :  { %v1465_v6 = vadd.f32 %v1458_v35, %v1402_v1  ;;  %v4895_v1 = vld [vmem:[%s5872_s1 + $0x290] sm:$0xff]  }
 0x394   :  { %v4449_v36 = vpop.f32.mrf.mxu0 }
 0x396   :  { %v1461_v39 = vpop.f32.mrf.mxu0 }
 0x397   :  { %v1466_v9 = vadd.f32 %v1461_v39, %v1403_v5  ;;  %v4906_v5 = vld [vmem:[%s5872_s1 + $0x2f4] sm:$0xff]  }
 0x398   :  { %v4450_v29 = vpop.f32.mrf.mxu0 }
 0x39a   :  { %v1521_v37 = vpop.f32.mrf.mxu0 }
 0x39b   :  { %v1528_v10 = vadd.f32 %v1521_v37, %v1465_v6  ;;  %v4910_v6 = vld [vmem:[%s5872_s1 + $0x2ec] sm:$0xff]  }
 0x39c   :  { %v4457_v41 = vpop.f32.mrf.mxu0 }
 0x39e   :  { %v1524_v42 = vpop.f32.mrf.mxu0 }
 0x39f   :  { %v1529_v13 = vadd.f32 %v1524_v42, %v1466_v9 }
 0x3a0   :  { %v4458_v43 = vpop.f32.mrf.mxu0 }
 0x3a2   :  { %v1584_v27 = vpop.f32.mrf.mxu0  ;;  %v1773_v40 = vpop.f32.mrf.mxu1 }
 0x3a3   :  { %v1591_v14 = vadd.f32 %v1584_v27, %v1528_v10 }
 0x3a4   :  { %v4465_v45 = vpop.f32.mrf.mxu0  ;;  %v4489_v47 = vpop.f32.mrf.mxu1 }
 0x3a6   :  { %v1587_v38 = vpop.f32.mrf.mxu0  ;;  %v1776_v46 = vpop.f32.mrf.mxu1 }
 0x3a7   :  { %v1592_v18 = vadd.f32 %v1587_v38, %v1529_v13 }
 0x3a8   :  { %v4466_v48 = vpop.f32.mrf.mxu0  ;;  %v4490_v50 = vpop.f32.mrf.mxu1 }
 0x3aa   :  { %v1647_v52 = vpop.f32.mrf.mxu0 }
 0x3ab   :  { %v1654_v16 = vadd.f32 %v1647_v52, %v1591_v14  ;;  %v4908_v14 = vld [vmem:[%s5872_s1 + $0x2d4] sm:$0xff]  }
 0x3ac   :  { %v4473_v53 = vpop.f32.mrf.mxu0  ;;  %v1899_v54 = vpop.f32.mrf.mxu1 }
 0x3ae   :  { %v1650_v56 = vpop.f32.mrf.mxu0  ;;  %v4505_v58 = vpop.f32.mrf.mxu1 }
 0x3af   :  { %v1655_v21 = vadd.f32 %v1650_v56, %v1592_v18 }
 0x3b0   :  { %v4474_v60 = vpop.f32.mrf.mxu0  ;;  %v1902_v61 = vpop.f32.mrf.mxu1 }
 0x3b2   :  { %v1710_v63 = vpop.f32.mrf.mxu0  ;;  %v4506_v0 = vpop.f32.mrf.mxu1 }
 0x3b3   :  { %v1717_v22 = vadd.f32 %v1710_v63, %v1654_v16  ;;  %v4899_v63 = vld [vmem:[%s5872_s1 + $0x304] sm:$0xff]   ;;  %v4903_v0 = vld [vmem:[%s5872_s1 + $0x2fc] sm:$0xff]  }
 0x3b4   :  { %v4481_v3 = vpop.f32.mrf.mxu0  ;;  %v2025_v4 = vpop.f32.mrf.mxu1 }
 0x3b5   :  { %v1780_v26 = vadd.f32 %v1773_v40, %v1717_v22  ;;  %v4897_v3 = vld [vmem:[%s5872_s1 + $0x2a0] sm:$0xff]  }
 0x3b6   :  { %v1713_v7 = vpop.f32.mrf.mxu0  ;;  %v4521_v8 = vpop.f32.mrf.mxu1 }
 0x3b7   :  { %v1718_v25 = vadd.f32 %v1713_v7, %v1655_v21  ;;  %v4905_v8 = vld [vmem:[%s5872_s1 + $0x2e4] sm:$0xff]   ;;  %v4914_v21 = vld [vmem:[%s5872_s1 + $0x33c] sm:$0xff]  }
 0x3b8   :  { %v4482_v11 = vpop.f32.mrf.mxu0  ;;  %v2028_v12 = vpop.f32.mrf.mxu1 }
 0x3b9   :  { %v1781_v35 = vadd.f32 %v1776_v46, %v1718_v25 }
 0x3ba   :  { %v1836_v15 = vpop.f32.mrf.mxu0  ;;  %v4522_v17 = vpop.f32.mrf.mxu1 }
 0x3bb   :  { %v1843_v33 = vadd.f32 %v1836_v15, %v1780_v26  ;;  %v4912_v17 = vld [vmem:[%s5872_s1 + $0x344] sm:$0xff]   ;;  %v4913_v26 = vld [vmem:[%s5872_s1 + $0x31c] sm:$0xff]  }
 0x3bc   :  { %v4497_v19 = vpop.f32.mrf.mxu0  ;;  %v2151_v20 = vpop.f32.mrf.mxu1 }
 0x3bd   :  { %v1906_v37 = vadd.f32 %v1899_v54, %v1843_v33  ;;  %v4909_v19 = vld [vmem:[%s5872_s1 + $0x2cc] sm:$0xff]  }
 0x3be   :  { %v1839_v23 = vpop.f32.mrf.mxu0  ;;  %v4537_v24 = vpop.f32.mrf.mxu1 }
 0x3bf   :  { %v1844_v39 = vadd.f32 %v1839_v23, %v1781_v35  ;;  %v4911_v23 = vld [vmem:[%s5872_s1 + $0x324] sm:$0xff]   ;;  %v4916_v24 = vld [vmem:[%s5872_s1 + $0x334] sm:$0xff]  }
 0x3c0   :  { %v4498_v28 = vpop.f32.mrf.mxu0  ;;  %v2154_v30 = vpop.f32.mrf.mxu1 }
 0x3c1   :  { %v1907_v43 = vadd.f32 %v1902_v61, %v1844_v39  ;;  %v4920_v39 = vld [vmem:[%s5872_s1 + $0x384] sm:$0xff]  }
 0x3c2   :  { %v1962_v31 = vpop.f32.mrf.mxu0  ;;  %v4538_v32 = vpop.f32.mrf.mxu1 }
 0x3c3   :  { %v1969_v42 = vadd.f32 %v1962_v31, %v1906_v37  ;;  %v4918_v31 = vld [vmem:[%s5872_s1 + $0x32c] sm:$0xff]  }
 0x3c4   :  { %v4513_v36 = vpop.f32.mrf.mxu0 }
 0x3c5   :  { %v2032_v47 = vadd.f32 %v2025_v4, %v1969_v42  ;;  %v4898_v4 = vld [vmem:[%s5872_s1 + $0x2a8] ss:$0 sps:$4 sm:$0xff]   ;;  %v4915_v36 = vld [vmem:[%s5872_s1 + $0x314] sm:$0xff]   ;;  %v4922_v42 = vld [vmem:[%s5872_s1 + $0x37c] sm:$0xff]  }
 0x3c6   :  { %v1965_v29 = vpop.f32.mrf.mxu0 }
 0x3c7   :  { %v1970_v27 = vadd.f32 %v1965_v29, %v1907_v43 }
 0x3c8   :  { %v4514_v41 = vpop.f32.mrf.mxu0 }
 0x3c9   :  { %v2033_v48 = vadd.f32 %v2028_v12, %v1970_v27  ;;  %v4907_v12 = vld [vmem:[%s5872_s1 + $0x2dc] sm:$0xff]   ;;  %v4917_v41 = vld [vmem:[%s5872_s1 + $0x30c] sm:$0xff]   ;;  %v4919_v27 = vld [vmem:[%s5872_s1 + $0x364] sm:$0xff]  }
 0x3ca   :  { %v2088_v44 = vpop.f32.mrf.mxu0 }
 0x3cb   :  { %v2095_v38 = vadd.f32 %v2088_v44, %v2032_v47 }
 0x3cc   :  { %v4529_v45 = vpop.f32.mrf.mxu0 }
 0x3cd   :  { %v2158_v52 = vadd.f32 %v2151_v20, %v2095_v38  ;;  %v4924_v45 = vld [vmem:[%s5872_s1 + $0x374] sm:$0xff]  }
 0x3ce   :  { %v2091_v49 = vpop.f32.mrf.mxu0 }
 0x3cf   :  { %v2096_v40 = vadd.f32 %v2091_v49, %v2033_v48  ;;  %v4921_v48 = vld [vmem:[%s5872_s1 + $0x35c] sm:$0xff]  }
 0x3d0   :  { %v4530_v50 = vpop.f32.mrf.mxu0 }
 0x3d1   :  { %v2159_v55 = vadd.f32 %v2154_v30, %v2096_v40  ;;  %v4926_v50 = vld [vmem:[%s5872_s1 + $0x36c] sm:$0xff]  }
 0x3d2   :  { %v2214_v51 = vpop.f32.mrf.mxu0 }
 0x3d3   :  { %v2221_v46 = vadd.f32 %v2214_v51, %v2158_v52 }
 0x3d4   :  { %v4545_v53 = vpop.f32.mrf.mxu0 }
 0x3d5   :  { %v2223_v59 = vmax.f32 %v2221_v46, 0.0  ;;  %v4923_v53 = vld [vmem:[%s5872_s1 + $0x354] sm:$0xff]   ;;  %v4928_v46 = vld [vmem:[%s5872_s1 + $0x3c4] sm:$0xff]  }
 0x3d6   :  { %v2217_v56 = vpop.f32.mrf.mxu0 }
 0x3d7   :  { %v2222_v58 = vadd.f32 %v2217_v56, %v2159_v55  ;;  %v4925_v55 = vld [vmem:[%s5872_s1 + $0x34c] sm:$0xff]   ;;  %v4930_v56 = vld [vmem:[%s5872_s1 + $0x3bc] sm:$0xff]  }
 0x3d8   :  { %v4546_v54 = vpop.f32.mrf.mxu0 }
 0x3d9   :  { %v2224_v60 = vmax.f32 %v2222_v58, 0.0  ;;  %v4927_v58 = vld [vmem:[%s5872_s1 + $0x3a4] sm:$0xff]   ;;  %v4932_v54 = vld [vmem:[%s5872_s1 + $0x3b4] sm:$0xff]  }
 0x3db   :  { %v2225_v61 = vpack.c.bf16 %v2224_v60, %v2223_v59  ;;  %v4929_v60 = vld [vmem:[%s5872_s1 + $0x39c] sm:$0xff]  }
 0x3dd   :  { %4548 = vmatpush3.bf16.msra.mxu1 %v2225_v61  ;;  %v4934_v61 = vld [vmem:[%s5872_s1 + $0x3ac] sm:$0xff]  }
 0x3de   :  { %4593 = vmatprep.subr.bf16.mxu1 %v4984_v34 }
 0x3e0   :  { %4550 = vmatmul.mubr.msk.bf16.vlgmr.msra.gmra.mxu1 %vm2258_vm5, %v4894_v62 }
 0x3e1   :  { %4553 = vmatprep.mubr.msk.bf16.mxu1 %vm4985_vm3, %v4984_v34  ;;  %4594 = vmatpush3.bf16.msra.mxu1 %v4899_v63  ;;  %v4931_v63 = vld [vmem:[%s5872_s1 + $0x394] sm:$0xff]  }
 0x3e2   :  { %4595 = vmatprep.subr.bf16.mxu1 %v4984_v34 }
 0x3e5   :  { %4596 = vmatpush3.bf16.msra.mxu1 %v4903_v0  ;;  %v4933_v0 = vld [vmem:[%s5872_s1 + $0x38c] sm:$0xff]  }
 0x3e6   :  { %4597 = vmatprep.subr.bf16.mxu1 %v4984_v34 }
 0x3e8   :  { %4554 = vmatmul.mubr.msk.bf16.gmra.mxu1 %vm2258_vm5, %v4895_v1 }
 0x3e9   :  { %4557 = vmatprep.mubr.msk.bf16.mxu1 %vm4985_vm3, %v4984_v34  ;;  %4598 = vmatpush3.bf16.msra.mxu1 %v4906_v5  ;;  %v4938_v5 = vld [vmem:[%s5872_s1 + $0x3d0] sm:$0xff]  }
 0x3ea   :  { %4599 = vmatprep.subr.bf16.mxu1 %v4984_v34 }
 0x3ed   :  { %4600 = vmatpush3.bf16.msra.mxu1 %v4910_v6  ;;  %v4943_v6 = vld [vmem:[%s5872_s1 + $0x498] sm:$0xff]  }
 0x3ee   :  { %4617 = vmatprep.subr.bf16.mxu1 %v4984_v34 }
 0x3f0   :  { %4558 = vmatmul.mubr.msk.bf16.gmra.mxu1 %vm2258_vm5, %v4896_v2  ;;  %v4935_v2 = vld [vmem:[%s5872_s1 + $0x3e8] sm:$0xff]  }
 0x3f1   :  { %4561 = vmatprep.mubr.msk.bf16.mxu1 %vm4985_vm3, %v4984_v34 }
 0x3f8   :  { %4562 = vmatmul.mubr.msk.bf16.gmra.mxu1 %vm2258_vm5, %v4897_v3  ;;  %v4936_v3 = vld [vmem:[%s5872_s1 + $0x3e0] sm:$0xff]  }
 0x3f9   :  { %4565 = vmatprep.mubr.msk.bf16.mxu1 %vm4985_vm3, %v4984_v34 }
 0x400   :  { %4566 = vmatmul.mubr.msk.bf16.gmra.mxu1 %vm2258_vm5, %v4898_v4  ;;  %v4937_v4 = vld [vmem:[%s5872_s1 + $0x3d8] sm:$0xff]  }
 0x401   :  { %4601 = vmatprep.mubr.msk.bf16.mxu1 %vm4985_vm3, %v4984_v34 }
 0x4a0   :  { %v2308_v7 = vpop.f32.mrf.mxu1 }
 0x4a1   :  { %v2348_v9 = vpack.c.bf16 %v2308_v7, %v2308_v7  ;;  %v4944_v7 = vld [vmem:[%s5872_s1 + $0x490] sm:$0xff]  }
 0x4a2   :  { %v4551_v10 = vpop.f32.mrf.mxu1 }
 0x4a3   :  { %4578 = vmatmul.mubr.msk.bf16.vlgmr.msra.gmra.mxu0 %vm422_vm2, %v2348_v9  ;;  %v4946_v9 = vld [vmem:[%s5872_s1 + $0x480] sm:$0xff]   ;;  %v4948_v10 = vld [vmem:[%s5872_s1 + $0x478] sm:$0xff]  }
 0x4a4   :  { %4582 = vmatpush3.bf16.msra.mxu0 %v4905_v8  ;;  %v2311_v11 = vpop.f32.mrf.mxu1  ;;  %4589 = vmatprep.mubr.msk.bf16.mxu0 %vm4985_vm3, %v4984_v34  ;;  %v4945_v8 = vld [vmem:[%s5872_s1 + $0x488] sm:$0xff]  }
 0x4a5   :  { %4583 = vmatprep.subr.bf16.mxu0 %v4984_v34  ;;  %v2429_v28 = vpack.c.bf16 %v2311_v11, %v2311_v11  ;;  %v4950_v11 = vld [vmem:[%s5872_s1 + $0x470] sm:$0xff]  }
 0x4a6   :  { %v4552_v13 = vpop.f32.mrf.mxu1 }
 0x4a8   :  { %4584 = vmatpush3.bf16.msra.mxu0 %v4907_v12  ;;  %v2316_v15 = vpop.f32.mrf.mxu1  ;;  %v4952_v12 = vld [vmem:[%s5872_s1 + $0x468] sm:$0xff]  }
 0x4a9   :  { %4585 = vmatprep.subr.bf16.mxu0 %v4984_v34  ;;  %v2506_v18 = vpack.c.bf16 %v2316_v15, %v2316_v15 }
 0x4aa   :  { %v4555_v16 = vpop.f32.mrf.mxu1 }
 0x4ab   :  { %4602 = vmatmul.mubr.msk.bf16.vlgmr.msra.gmra.mxu1 %vm422_vm2, %v2506_v18 }
 0x4ac   :  { %4586 = vmatpush3.bf16.msra.mxu0 %v4908_v14  ;;  %4618 = vmatpush3.bf16.msra.mxu1 %v4912_v17  ;;  %v2319_v20 = vpop.f32.mrf.mxu1 }
 0x4ad   :  { %4587 = vmatprep.subr.bf16.mxu0 %v4984_v34  ;;  %4619 = vmatprep.subr.bf16.mxu1 %v4984_v34  ;;  %v2583_v49 = vpack.c.bf16 %v2319_v20, %v2319_v20 }
 0x4ae   :  { %v4556_v22 = vpop.f32.mrf.mxu1  ;;  %4625 = vmatprep.mubr.msk.bf16.mxu1 %vm4985_vm3, %v4984_v34 }
 0x4b0   :  { %4588 = vmatpush3.bf16.msra.mxu0 %v4909_v19  ;;  %4620 = vmatpush3.bf16.msra.mxu1 %v4914_v21  ;;  %v2324_v25 = vpop.f32.mrf.mxu1 }
 0x4b1   :  { %4605 = vmatprep.subr.bf16.mxu0 %v4984_v34  ;;  %4621 = vmatprep.subr.bf16.mxu1 %v4984_v34  ;;  %v2660_v35 = vpack.c.bf16 %v2324_v25, %v2324_v25 }
 0x4b2   :  { %v4559_v30 = vpop.f32.mrf.mxu1 }
 0x4b3   :  { %4590 = vmatmul.mubr.msk.bf16.vlgmr.msra.gmra.mxu0 %vm422_vm2, %v2429_v28 }
 0x4b4   :  { %4606 = vmatpush3.bf16.msra.mxu0 %v4911_v23  ;;  %4622 = vmatpush3.bf16.msra.mxu1 %v4916_v24  ;;  %v5533_v32 = vpop.f32.mrf.mxu1 }
 0x4b5   :  { %4607 = vmatprep.subr.bf16.mxu0 %v4984_v34  ;;  %4623 = vmatprep.subr.bf16.mxu1 %v4984_v34  ;;  %v2737_v59 = vpack.c.bf16 %v5533_v32, %v5533_v32  ;;  %v2346_v32 = vld [vmem:[%s5872_s1 + $0x3cc] sm:$0x1] }
 0x4b6   :  { %4613 = vmatprep.mubr.msk.bf16.mxu0 %vm4985_vm3, %v4984_v34  ;;  %v4560_v33 = vpop.f32.mrf.mxu1 }
 0x4b8   :  { %4608 = vmatpush3.bf16.msra.mxu0 %v4913_v26  ;;  %4624 = vmatpush3.bf16.msra.mxu1 %v4918_v31  ;;  %v2332_v29 = vpop.f32.mrf.mxu1 }
 0x4b9   :  { %4609 = vmatprep.subr.bf16.mxu0 %v4984_v34  ;;  %4641 = vmatprep.subr.bf16.mxu1 %v4984_v34  ;;  %v2814_v52 = vpack.c.bf16 %v2332_v29, %v2332_v29 }
 0x4ba   :  { %v4563_v37 = vpop.f32.mrf.mxu1 }
 0x4bb   :  { %4626 = vmatmul.mubr.msk.bf16.vlgmr.msra.gmra.mxu1 %vm422_vm2, %v2660_v35 }
 0x4bc   :  { %4610 = vmatpush3.bf16.msra.mxu0 %v4915_v36  ;;  %4642 = vmatpush3.bf16.msra.mxu1 %v4920_v39  ;;  %v5554_v43 = vpop.f32.mrf.mxu1  ;;  %v2347_v36 = vunpack.c.l.bf16 %v2346_v32 }
 0x4bd   :  { %4611 = vmatprep.subr.bf16.mxu0 %v4984_v34  ;;  %4643 = vmatprep.subr.bf16.mxu1 %v4984_v34  ;;  %v2891_v1 = vpack.c.bf16 %v5554_v43, %v5554_v43 }
 0x4be   :  { %4649 = vmatprep.mubr.msk.bf16.mxu1 %vm4985_vm3, %v4984_v34  ;;  %v4564_v44 = vpop.f32.mrf.mxu1  ;;  %v2427_v37 = vrot.slane %v2347_v36, %v5165_v57  ;;  %v4963_v36 = vld [vmem:[%s5872_s1 + $0x448] sm:$0xff]  }
 0x4c0   :  { %4612 = vmatpush3.bf16.msra.mxu0 %v4917_v41  ;;  %4644 = vmatpush3.bf16.msra.mxu1 %v4922_v42  ;;  %v2340_v47 = vpop.f32.mrf.mxu1 }
 0x4c1   :  { %4629 = vmatprep.subr.bf16.mxu0 %v4984_v34  ;;  %4645 = vmatprep.subr.bf16.mxu1 %v4984_v34  ;;  %v2968_v62 = vpack.c.bf16 %v2340_v47, %v2340_v47 }
 0x4c2   :  { %v4567_v38 = vpop.f32.mrf.mxu1 }
 0x4c3   :  { %4614 = vmatmul.mubr.msk.bf16.vlgmr.msra.gmra.mxu0 %vm422_vm2, %v2583_v49 }
 0x4c4   :  { %4630 = vmatpush3.bf16.msra.mxu0 %v4919_v27  ;;  %4646 = vmatpush3.bf16.msra.mxu1 %v4924_v45  ;;  %v2343_v40 = vpop.f32.mrf.mxu1 }
 0x4c5   :  { %4631 = vmatprep.subr.bf16.mxu0 %v4984_v34  ;;  %4647 = vmatprep.subr.bf16.mxu1 %v4984_v34 }
 0x4c6   :  { %4637 = vmatprep.mubr.msk.bf16.mxu0 %vm4985_vm3, %v4984_v34  ;;  %v4568_v51 = vpop.f32.mrf.mxu1 }
 0x4c8   :  { %4632 = vmatpush3.bf16.msra.mxu0 %v4921_v48  ;;  %4648 = vmatpush3.bf16.msra.mxu1 %v4926_v50 }
 0x4c9   :  { %4633 = vmatprep.subr.bf16.mxu0 %v4984_v34  ;;  %4665 = vmatprep.subr.bf16.mxu1 %v4984_v34 }
 0x4cb   :  { %4650 = vmatmul.mubr.msk.bf16.vlgmr.msra.gmra.mxu1 %vm422_vm2, %v2814_v52 }
 0x4cc   :  { %4634 = vmatpush3.bf16.msra.mxu0 %v4923_v53  ;;  %4666 = vmatpush3.bf16.msra.mxu1 %v4928_v46 }
 0x4cd   :  { %4635 = vmatprep.subr.bf16.mxu0 %v4984_v34  ;;  %4667 = vmatprep.subr.bf16.mxu1 %v4984_v34 }
 0x4ce   :  { %4673 = vmatprep.mubr.msk.bf16.mxu1 %vm4985_vm3, %v4984_v34 }
 0x4d0   :  { %4636 = vmatpush3.bf16.msra.mxu0 %v4925_v55  ;;  %4668 = vmatpush3.bf16.msra.mxu1 %v4930_v56 }
 0x4d1   :  { %4653 = vmatprep.subr.bf16.mxu0 %v4984_v34  ;;  %4669 = vmatprep.subr.bf16.mxu1 %v4984_v34 }
 0x4d3   :  { %4638 = vmatmul.mubr.msk.bf16.vlgmr.msra.gmra.mxu0 %vm422_vm2, %v2737_v59 }
 0x4d4   :  { %4654 = vmatpush3.bf16.msra.mxu0 %v4927_v58  ;;  %4670 = vmatpush3.bf16.msra.mxu1 %v4932_v54 }
 0x4d5   :  { %4655 = vmatprep.subr.bf16.mxu0 %v4984_v34  ;;  %4671 = vmatprep.subr.bf16.mxu1 %v4984_v34 }
 0x4d6   :  { %4661 = vmatprep.mubr.msk.bf16.mxu0 %vm4985_vm3, %v4984_v34 }
 0x4d8   :  { %4656 = vmatpush3.bf16.msra.mxu0 %v4929_v60  ;;  %4672 = vmatpush3.bf16.msra.mxu1 %v4934_v61 }
 0x4d9   :  { %4657 = vmatprep.subr.bf16.mxu0 %v4984_v34  ;;  %4689 = vmatprep.subr.bf16.mxu1 %v4984_v34 }
 0x4db   :  { %4674 = vmatmul.mubr.msk.bf16.vlgmr.msra.gmra.mxu1 %vm422_vm2, %v2968_v62 }
 0x4dc   :  { %4658 = vmatpush3.bf16.msra.mxu0 %v4931_v63  ;;  %4705 = vmatprep.mubr.msk.bf16.mxu1 %vm4985_vm3, %v4984_v34  ;;  %v4939_v63 = vld [vmem:[%s5872_s1 + $0x408] sm:$0xff]  }
 0x4dd   :  { %4659 = vmatprep.subr.bf16.mxu0 %v4984_v34  ;;  %4690 = vmatpush3.bf16.msra.mxu1 %v4943_v6  ;;  %v4951_v6 = vld [vmem:[%s5872_s1 + $0x4c8] sm:$0xff]  }
 0x4de   :  { %4691 = vmatprep.subr.bf16.mxu1 %v4984_v34 }
 0x4e0   :  { %4660 = vmatpush3.bf16.msra.mxu0 %v4933_v0 }
 0x4e1   :  { %4677 = vmatprep.subr.bf16.mxu0 %v4984_v34  ;;  %4692 = vmatpush3.bf16.msra.mxu1 %v4944_v7  ;;  %v4953_v7 = vld [vmem:[%s5872_s1 + $0x4c0] sm:$0xff]  }
 0x4e2   :  { %4693 = vmatprep.subr.bf16.mxu1 %v4984_v34 }
 0x4e3   :  { %4662 = vmatmul.mubr.msk.bf16.vlgmr.msra.gmra.mxu0 %vm422_vm2, %v2891_v1  ;;  %v4940_v1 = vld [vmem:[%s5872_s1 + $0x400] sm:$0xff]  }
 0x4e4   :  { %4685 = vmatprep.mubr.msk.bf16.mxu0 %vm4985_vm3, %v4984_v34  ;;  %4678 = vmatpush3.bf16.msra.mxu0 %v4935_v2  ;;  %v4941_v2 = vld [vmem:[%s5872_s1 + $0x3f8] sm:$0xff]  }
 0x4e5   :  { %4679 = vmatprep.subr.bf16.mxu0 %v4984_v34  ;;  %4694 = vmatpush3.bf16.msra.mxu1 %v4945_v8  ;;  %v4954_v8 = vld [vmem:[%s5872_s1 + $0x460] sm:$0xff]  }
 0x4e6   :  { %4695 = vmatprep.subr.bf16.mxu1 %v4984_v34 }
 0x4e8   :  { %4680 = vmatpush3.bf16.msra.mxu0 %v4936_v3  ;;  %v4942_v3 = vld [vmem:[%s5872_s1 + $0x3f0] sm:$0xff]  }
 0x4e9   :  { %4681 = vmatprep.subr.bf16.mxu0 %v4984_v34  ;;  %4696 = vmatpush3.bf16.msra.mxu1 %v4946_v9  ;;  %v4955_v9 = vld [vmem:[%s5872_s1 + $0x4b8] sm:$0xff]  }
 0x4ea   :  { %4697 = vmatprep.subr.bf16.mxu1 %v4984_v34 }
 0x4ec   :  { %4682 = vmatpush3.bf16.msra.mxu0 %v4937_v4  ;;  %v4947_v4 = vld [vmem:[%s5872_s1 + $0x4d8] sm:$0xff]  }
 0x4ed   :  { %4683 = vmatprep.subr.bf16.mxu0 %v4984_v34  ;;  %4698 = vmatpush3.bf16.msra.mxu1 %v4948_v10  ;;  %v4957_v10 = vld [vmem:[%s5872_s1 + $0x4b0] sm:$0xff]  }
 0x4ee   :  { %4699 = vmatprep.subr.bf16.mxu1 %v4984_v34 }
 0x4f0   :  { %4684 = vmatpush3.bf16.msra.mxu0 %v4938_v5  ;;  %v4949_v5 = vld [vmem:[%s5872_s1 + $0x4d0] sm:$0xff]  }
 0x4f1   :  { %4709 = vmatprep.subr.bf16.mxu0 %v4984_v34  ;;  %4700 = vmatpush3.bf16.msra.mxu1 %v4950_v11  ;;  %v4959_v11 = vld [vmem:[%s5872_s1 + $0x4a8] sm:$0xff]  }
 0x4f2   :  { %4701 = vmatprep.subr.bf16.mxu1 %v4984_v34 }
 0x4f5   :  { %4702 = vmatpush3.bf16.msra.mxu1 %v4952_v12  ;;  %v4961_v12 = vld [vmem:[%s5872_s1 + $0x4a0] sm:$0xff]  }
 0x4f6   :  { %4703 = vmatprep.subr.bf16.mxu1 %v4984_v34 }
 0x4f9   :  { %4704 = vmatpush3.bf16.msra.mxu1 %v4954_v8 }
 0x4fa   :  { %4741 = vmatprep.subr.bf16.mxu1 %v4984_v34 }
 0x563   :  { %v2418_v13 = vpop.f32.mrf.mxu0 }
 0x564   :  { %v2428_v43 = vadd.f32 %v2427_v37, %v2418_v13  ;;  %v3049_v13 = vld [vmem:[%s5872_s1 + $0x450] sm:$0x1] }
 0x565   :  { %v4579_v14 = vpop.f32.mrf.mxu0 }
 0x566   :  { %v3050_v14 = vunpack.c.l.bf16 %v3049_v13 }
 0x567   :  { %v2421_v15 = vpop.f32.mrf.mxu0 }
 0x569   :  { %v4580_v17 = vpop.f32.mrf.mxu0 }
 0x56b   :  { %v2576_v18 = vpop.f32.mrf.mxu1 }
 0x56d   :  { %v4603_v16 = vpop.f32.mrf.mxu1 }
 0x56f   :  { %v2579_v19 = vpop.f32.mrf.mxu1 }
 0x571   :  { %v4604_v20 = vpop.f32.mrf.mxu1 }
 0x572   :  { %v4956_v20 = vld [vmem:[%s5872_s1 + $0x428] sm:$0xff]  }
 0x573   :  { %v2499_v21 = vpop.f32.mrf.mxu0 }
 0x574   :  { %v2505_v27 = vadd.f32 %v2499_v21, %v2428_v43  ;;  %v4965_v43 = vld [vmem:[%s5872_s1 + $0x438] sm:$0xff]  }
 0x575   :  { %v4591_v22 = vpop.f32.mrf.mxu0 }
 0x576   :  { %v2582_v49 = vadd.f32 %v2576_v18, %v2505_v27  ;;  %v4966_v27 = vld [vmem:[%s5872_s1 + $0x430] sm:$0xff]  }
 0x577   :  { %v2502_v23 = vpop.f32.mrf.mxu0 }
 0x578   :  { %v4958_v23 = vld [vmem:[%s5872_s1 + $0x420] sm:$0xff]  }
 0x579   :  { %v4592_v24 = vpop.f32.mrf.mxu0 }
 0x57a   :  { %v3234_v24 = vld [vmem:[%s5872_s1 + $0x454] sm:$0x1] }
 0x57b   :  { %v2730_v25 = vpop.f32.mrf.mxu1 }
 0x57d   :  { %v4627_v28 = vpop.f32.mrf.mxu1 }
 0x57e   :  { %v3235_v28 = vunpack.c.l.bf16 %v3234_v24 }
 0x57f   :  { %v2733_v30 = vpop.f32.mrf.mxu1 }
 0x581   :  { %v4628_v26 = vpop.f32.mrf.mxu1 }
 0x582   :  { %v4962_v26 = vld [vmem:[%s5872_s1 + $0x410] sm:$0xff]  }
 0x583   :  { %v2653_v31 = vpop.f32.mrf.mxu0 }
 0x584   :  { %v2659_v48 = vadd.f32 %v2653_v31, %v2582_v49  ;;  %v4972_v49 = vld [vmem:[%s5872_s1 + $0x4f8] sm:$0xff]  }
 0x585   :  { %v4615_v33 = vpop.f32.mrf.mxu0 }
 0x586   :  { %v2736_v51 = vadd.f32 %v2730_v25, %v2659_v48  ;;  %v4960_v25 = vld [vmem:[%s5872_s1 + $0x418] sm:$0xff]   ;;  %v4974_v48 = vld [vmem:[%s5872_s1 + $0x4f0] sm:$0xff]  }
 0x587   :  { %v2656_v35 = vpop.f32.mrf.mxu0 }
 0x589   :  { %v4616_v39 = vpop.f32.mrf.mxu0 }
 0x58b   :  { %v2884_v29 = vpop.f32.mrf.mxu1 }
 0x58d   :  { %v4651_v41 = vpop.f32.mrf.mxu1 }
 0x58e   :  { %v4964_v41 = vld [vmem:[%s5872_s1 + $0x440] sm:$0xff]  }
 0x58f   :  { %v2887_v42 = vpop.f32.mrf.mxu1 }
 0x590   :  { %v4968_v42 = vld [vmem:[%s5872_s1 + $0x510] sm:$0xff]  }
 0x591   :  { %v4652_v44 = vpop.f32.mrf.mxu1 }
 0x592   :  { %v4969_v44 = vld [vmem:[%s5872_s1 + $0x508] sm:$0xff]  }
 0x593   :  { %v2807_v45 = vpop.f32.mrf.mxu0 }
 0x594   :  { %v2813_v53 = vadd.f32 %v2807_v45, %v2736_v51  ;;  %v4970_v45 = vld [vmem:[%s5872_s1 + $0x500] sm:$0xff]  }
 0x595   :  { %v4639_v47 = vpop.f32.mrf.mxu0  ;;  %v4977_v51 = vld [vmem:[%s5872_s1 + $0x540] sm:$0xff]  }
 0x596   :  { %v2890_v56 = vadd.f32 %v2884_v29, %v2813_v53  ;;  %v4967_v29 = vld [vmem:[%s5872_s1 + $0x518] sm:$0xff]  }
 0x597   :  { %v2810_v38 = vpop.f32.mrf.mxu0  ;;  %v4971_v47 = vld [vmem:[%s5872_s1 + $0x558] sm:$0xff]  }
 0x598   :  { %v4973_v38 = vld [vmem:[%s5872_s1 + $0x550] sm:$0xff]   ;;  %v4979_v53 = vld [vmem:[%s5872_s1 + $0x538] sm:$0xff]  }
 0x599   :  { %v4640_v50 = vpop.f32.mrf.mxu0 }
 0x59a   :  { %v4975_v50 = vld [vmem:[%s5872_s1 + $0x548] sm:$0xff]  }
 0x59b   :  { %v3038_v40 = vpop.f32.mrf.mxu1 }
 0x59d   :  { %v4675_v52 = vpop.f32.mrf.mxu1 }
 0x59e   :  { %v4978_v52 = vld [vmem:[%s5872_s1 + $0x4e0] sm:$0xff]  }
 0x59f   :  { %v3041_v46 = vpop.f32.mrf.mxu1 }
 0x5a0   :  { %v4980_v46 = vld [vmem:[%s5872_s1 + $0x530] sm:$0xff]  }
 0x5a1   :  { %v4676_v55 = vpop.f32.mrf.mxu1 }
 0x5a2   :  { %v4981_v55 = vld [vmem:[%s5872_s1 + $0x528] sm:$0xff]  }
 0x5a3   :  { %v2961_v58 = vpop.f32.mrf.mxu0 }
 0x5a4   :  { %v2967_v57 = vadd.f32 %v2961_v58, %v2890_v56  ;;  %v4982_v56 = vld [vmem:[%s5872_s1 + $0x520] sm:$0xff]  }
 0x5a5   :  { %v4663_v54 = vpop.f32.mrf.mxu0 }
 0x5a6   :  { %v3044_v59 = vadd.f32 %v3038_v40, %v2967_v57  ;;  %v4976_v40 = vld [vmem:[%s5872_s1 + $0x4e8] sm:$0xff]  }
 0x5a7   :  { %v2964_v60 = vpop.f32.mrf.mxu0 }
 0x5a8   :  { %v3045_v61 = vmax.f32 %v3044_v59, 0.0  ;;  %v3047_v60 = vld [vmem:[%s5872_s1 + $0x560] sm:$0x1] }
 0x5a9   :  { %v4664_v62 = vpop.f32.mrf.mxu0 }
 0x5aa   :  { %v5688_v0 = vpack.c.bf16 %v3045_v61, %v3045_v61  ;;  %v3416_v61 = vld [vmem:[%s5872_s1 + $0x458] sm:$0x1]  ;;  %v3048_v62 = vunpack.c.l.bf16 %v3047_v60 }
 0x5ac   :  { %4686 = vmatmul.mubr.msk.bf16.vlgmr.msra.gmra.mxu0 %vm422_vm2, %v5688_v0 }
 0x5ad   :  { %4710 = vmatpush3.bf16.msra.mxu0 %v4939_v63  ;;  %4717 = vmatprep.mubr.msk.bf16.mxu0 %vm4985_vm3, %v4984_v34  ;;  %v3417_v63 = vunpack.c.l.bf16 %v3416_v61 }
 0x5ae   :  { %4711 = vmatprep.subr.bf16.mxu0 %v4984_v34 }
 0x5b1   :  { %4712 = vmatpush3.bf16.msra.mxu0 %v4940_v1 }
 0x5b2   :  { %4713 = vmatprep.subr.bf16.mxu0 %v4984_v34 }
 0x5b5   :  { %4714 = vmatpush3.bf16.msra.mxu0 %v4941_v2 }
 0x5b6   :  { %4715 = vmatprep.subr.bf16.mxu0 %v4984_v34 }
 0x5b9   :  { %4716 = vmatpush3.bf16.msra.mxu0 %v4942_v3 }
 0x5ba   :  { %4721 = vmatprep.subr.bf16.mxu0 %v4984_v34 }
 0x5bc   :  { %4718 = vmatmul.mubr.msk.bf16.vlgmr.msra.gmra.mxu0 %vm422_vm2, %v5688_v0 }
 0x5bd   :  { %4722 = vmatpush3.bf16.msra.mxu0 %v4947_v4  ;;  %4737 = vmatprep.mubr.msk.bf16.mxu0 %vm4985_vm3, %v4984_v34 }
 0x5be   :  { %4723 = vmatprep.subr.bf16.mxu0 %v4984_v34 }
 0x5c1   :  { %4724 = vmatpush3.bf16.msra.mxu0 %v4949_v5 }
 0x5c2   :  { %4725 = vmatprep.subr.bf16.mxu0 %v4984_v34 }
 0x5c5   :  { %4726 = vmatpush3.bf16.msra.mxu0 %v4951_v6 }
 0x5c6   :  { %4727 = vmatprep.subr.bf16.mxu0 %v4984_v34 }
 0x5c9   :  { %4728 = vmatpush3.bf16.msra.mxu0 %v4953_v7 }
 0x5ca   :  { %4729 = vmatprep.subr.bf16.mxu0 %v4984_v34 }
 0x5cd   :  { %4730 = vmatpush3.bf16.msra.mxu0 %v4955_v9 }
 0x5ce   :  { %4731 = vmatprep.subr.bf16.mxu0 %v4984_v34 }
 0x5d1   :  { %4732 = vmatpush3.bf16.msra.mxu0 %v4957_v10 }
 0x5d2   :  { %4733 = vmatprep.subr.bf16.mxu0 %v4984_v34 }
 0x5d5   :  { %4734 = vmatpush3.bf16.msra.mxu0 %v4959_v11 }
 0x5d6   :  { %4735 = vmatprep.subr.bf16.mxu0 %v4984_v34 }
 0x5d9   :  { %4736 = vmatpush3.bf16.msra.mxu0 %v4961_v12  ;;  %v3598_v12 = vld [vmem:[%s5872_s1 + $0x45c] sm:$0x1] }
 0x5da   :  { %4773 = vmatprep.subr.bf16.mxu0 %v4984_v34  ;;  %v3599_v13 = vunpack.c.l.bf16 %v3598_v12 }
 0x66c   :  { %v3120_v15 = vpop.f32.mrf.mxu0 }
 0x66d   :  { %v3126_v17 = vadd.f32 %v3120_v15, %v3050_v14 }
 0x66e   :  { %v4687_v18 = vpop.f32.mrf.mxu0 }
 0x66f   :  { %v3127_v16 = vmax.f32 %v3126_v17, 0.0 }
 0x670   :  { %v3123_v19 = vpop.f32.mrf.mxu0 }
 0x671   :  { %v3128_v21 = vpack.c.bf16 %v3127_v16, %v3127_v16 }
 0x672   :  { %v4688_v22 = vpop.f32.mrf.mxu0 }
 0x673   :  { %4706 = vmatmul.mubr.bf16.vlgmr.msra.gmra.mxu1 %v3128_v21 }
 0x674   :  { %4742 = vmatpush3.bf16.msra.mxu1 %v4956_v20  ;;  %4749 = vmatprep.mubr.msk.bf16.mxu1 %vm4985_vm3, %v4984_v34 }
 0x675   :  { %4743 = vmatprep.subr.bf16.mxu1 %v4984_v34 }
 0x678   :  { %4744 = vmatpush3.bf16.msra.mxu1 %v4958_v23 }
 0x679   :  { %4745 = vmatprep.subr.bf16.mxu1 %v4984_v34 }
 0x67c   :  { %v3302_v30 = vpop.f32.mrf.mxu0  ;;  %4746 = vmatpush3.bf16.msra.mxu1 %v4960_v25 }
 0x67d   :  { %v3308_v31 = vadd.f32 %v3302_v30, %v3235_v28  ;;  %4747 = vmatprep.subr.bf16.mxu1 %v4984_v34 }
 0x67e   :  { %v4719_v32 = vpop.f32.mrf.mxu0 }
 0x67f   :  { %v3309_v33 = vmax.f32 %v3308_v31, 0.0 }
 0x680   :  { %v3305_v35 = vpop.f32.mrf.mxu0  ;;  %4748 = vmatpush3.bf16.msra.mxu1 %v4962_v26 }
 0x681   :  { %v3310_v39 = vpack.c.bf16 %v3309_v33, %v3309_v33  ;;  %4753 = vmatprep.subr.bf16.mxu1 %v4984_v34 }
 0x682   :  { %v4720_v37 = vpop.f32.mrf.mxu0 }
 0x683   :  { %4738 = vmatmul.mubr.bf16.vlgmr.msra.gmra.mxu0 %v3310_v39  ;;  %4750 = vmatmul.mubr.msk.bf16.vlgmr.msra.gmra.mxu1 %vm422_vm2, %v5688_v0 }
 0x684   :  { %4774 = vmatpush3.bf16.msra.mxu0 %v4963_v36  ;;  %4781 = vmatprep.mubr.msk.bf16.mxu0 %vm4985_vm3, %v4984_v34 }
 0x685   :  { %4775 = vmatprep.subr.bf16.mxu0 %v4984_v34  ;;  %4754 = vmatpush3.bf16.msra.mxu1 %v4967_v29 }
 0x686   :  { %4755 = vmatprep.subr.bf16.mxu1 %v4984_v34  ;;  %4769 = vmatprep.mubr.msk.bf16.mxu1 %vm4985_vm3, %v4984_v34 }
 0x688   :  { %4776 = vmatpush3.bf16.msra.mxu0 %v4964_v41 }
 0x689   :  { %4777 = vmatprep.subr.bf16.mxu0 %v4984_v34  ;;  %4756 = vmatpush3.bf16.msra.mxu1 %v4968_v42 }
 0x68a   :  { %4757 = vmatprep.subr.bf16.mxu1 %v4984_v34 }
 0x68c   :  { %4778 = vmatpush3.bf16.msra.mxu0 %v4965_v43 }
 0x68d   :  { %4779 = vmatprep.subr.bf16.mxu0 %v4984_v34  ;;  %4758 = vmatpush3.bf16.msra.mxu1 %v4969_v44 }
 0x68e   :  { %4759 = vmatprep.subr.bf16.mxu1 %v4984_v34 }
 0x690   :  { %4780 = vmatpush3.bf16.msra.mxu0 %v4966_v27 }
 0x691   :  { %4785 = vmatprep.subr.bf16.mxu0 %v4984_v34  ;;  %4760 = vmatpush3.bf16.msra.mxu1 %v4970_v45 }
 0x692   :  { %4761 = vmatprep.subr.bf16.mxu1 %v4984_v34 }
 0x693   :  { %4782 = vmatmul.mubr.msk.bf16.vlgmr.msra.gmra.mxu0 %vm422_vm2, %v5688_v0 }
 0x694   :  { %4801 = vmatprep.mubr.msk.bf16.mxu0 %vm4985_vm3, %v4984_v34  ;;  %4786 = vmatpush3.bf16.msra.mxu0 %v4971_v47 }
 0x695   :  { %4762 = vmatpush3.bf16.msra.mxu1 %v4972_v49  ;;  %4787 = vmatprep.subr.bf16.mxu0 %v4984_v34 }
 0x696   :  { %4763 = vmatprep.subr.bf16.mxu1 %v4984_v34 }
 0x698   :  { %4788 = vmatpush3.bf16.msra.mxu0 %v4973_v38 }
 0x699   :  { %4764 = vmatpush3.bf16.msra.mxu1 %v4974_v48  ;;  %4789 = vmatprep.subr.bf16.mxu0 %v4984_v34 }
 0x69a   :  { %4765 = vmatprep.subr.bf16.mxu1 %v4984_v34 }
 0x69c   :  { %4790 = vmatpush3.bf16.msra.mxu0 %v4975_v50 }
 0x69d   :  { %4766 = vmatpush3.bf16.msra.mxu1 %v4976_v40  ;;  %4791 = vmatprep.subr.bf16.mxu0 %v4984_v34 }
 0x69e   :  { %4767 = vmatprep.subr.bf16.mxu1 %v4984_v34 }
 0x6a0   :  { %4792 = vmatpush3.bf16.msra.mxu0 %v4977_v51 }
 0x6a1   :  { %4768 = vmatpush3.bf16.msra.mxu1 %v4978_v52  ;;  %4793 = vmatprep.subr.bf16.mxu0 %v4984_v34 }
 0x6a4   :  { %4794 = vmatpush3.bf16.msra.mxu0 %v4979_v53 }
 0x6a5   :  { %4795 = vmatprep.subr.bf16.mxu0 %v4984_v34 }
 0x6a8   :  { %4796 = vmatpush3.bf16.msra.mxu0 %v4980_v46 }
 0x6a9   :  { %4797 = vmatprep.subr.bf16.mxu0 %v4984_v34 }
 0x6ac   :  { %4798 = vmatpush3.bf16.msra.mxu0 %v4981_v55 }
 0x6ad   :  { %4799 = vmatprep.subr.bf16.mxu0 %v4984_v34 }
 0x6b0   :  { %4800 = vmatpush3.bf16.msra.mxu0 %v4982_v56 }
 0x733   :  { %v3227_v58 = vpop.f32.mrf.mxu1 }
 0x734   :  { %v3233_v34 = vadd.f32 %v3227_v58, %v3048_v62 }
 0x735   :  { %v4707_v57 = vpop.f32.mrf.mxu1 }
 0x737   :  { %v3230_v54 = vpop.f32.mrf.mxu1 }
 0x739   :  { %v4708_v59 = vpop.f32.mrf.mxu1 }
 0x743   :  { %v3409_v0 = vpop.f32.mrf.mxu0  ;;  %v3484_v1 = vpop.f32.mrf.mxu1 }
 0x744   :  { %v3415_v2 = vadd.f32 %v3409_v0, %v3233_v34  ;;  %v3490_v3 = vadd.f32 %v3484_v1, %v3417_v63 }
 0x745   :  { %v4739_v4 = vpop.f32.mrf.mxu0  ;;  %v4751_v5 = vpop.f32.mrf.mxu1 }
 0x746   :  { %v3491_v6 = vmax.f32 %v3490_v3, 0.0 }
 0x747   :  { %v3412_v7 = vpop.f32.mrf.mxu0  ;;  %v3487_v8 = vpop.f32.mrf.mxu1 }
 0x748   :  { %v3492_v9 = vpack.c.bf16 %v3491_v6, %v3491_v6 }
 0x749   :  { %v4740_v10 = vpop.f32.mrf.mxu0  ;;  %v4752_v11 = vpop.f32.mrf.mxu1 }
 0x74a   :  { %4770 = vmatmul.mubr.bf16.vlgmr.msra.gmra.mxu1 %v3492_v9 }
 0x753   :  { %v3666_v14 = vpop.f32.mrf.mxu0 }
 0x754   :  { %v3672_v15 = vadd.f32 %v3666_v14, %v3599_v13 }
 0x755   :  { %v4783_v17 = vpop.f32.mrf.mxu0 }
 0x756   :  { %v3673_v18 = vmax.f32 %v3672_v15, 0.0 }
 0x757   :  { %v3669_v16 = vpop.f32.mrf.mxu0 }
 0x758   :  { %v3674_v19 = vpack.c.bf16 %v3673_v18, %v3673_v18 }
 0x759   :  { %v4784_v20 = vpop.f32.mrf.mxu0 }
 0x75a   :  { %4802 = vmatmul.mubr.bf16.vlgmr.msra.gmra.mxu0 %v3674_v19 }
 0x80a   :  { %v3591_v21 = vpop.f32.mrf.mxu1 }
 0x80b   :  { %v3597_v25 = vadd.f32 %v3591_v21, %v3415_v2 }
 0x80c   :  { %v4771_v22 = vpop.f32.mrf.mxu1 }
 0x80e   :  { %v3594_v23 = vpop.f32.mrf.mxu1 }
 0x810   :  { %v4772_v24 = vpop.f32.mrf.mxu1 }
 0x81a   :  { %v3773_v28 = vpop.f32.mrf.mxu0 }
 0x81b   :  { %v3779_v30 = vadd.f32 %v3773_v28, %v3597_v25 }
 0x81c   :  { %v4803_v26 = vpop.f32.mrf.mxu0 }
 0x81d   :  { %3780 = vst [vmem:[%s5873_s2] sm:$0x1] %v3779_v30 }
 0x81e   :  { %v3776_v31 = vpop.f32.mrf.mxu0 }
 0x820   :  { %v4804_v32 = vpop.f32.mrf.mxu0 }

</bundles_post_ra>
